<compile_context>
chip_gen: v5e
topology: v5e:2x2
jax: 0.10.0
libtpu: 0.0.40
codegen_flags: <defaults>
</compile_context>

<pallas_src>
import math
import functools

import jax
import jax.numpy as jnp
from jax.experimental import pallas as pl
from jax.experimental.pallas import tpu as pltpu


# ----------------------------- tiled matmul --------------------------------

def _matmul_kernel(x_ref, w_ref, b_ref, o_ref, acc_ref):
    k = pl.program_id(2)

    @pl.when(k == 0)
    def _():
        acc_ref[...] = jnp.zeros_like(acc_ref)

    acc_ref[...] += jnp.dot(x_ref[...].astype(jnp.bfloat16),
                            w_ref[...].astype(jnp.bfloat16),
                            preferred_element_type=jnp.float32)

    @pl.when(k == pl.num_programs(2) - 1)
    def _():
        o_ref[...] = (acc_ref[...] + b_ref[...]).astype(o_ref.dtype)


def _round_up(x, m):
    return (x + m - 1) // m * m


def tiled_linear(x, w, b, *, tm=256, tn=256, tk=256):
    """x:(M,K) @ w:(K,N) + b:(N,) -> (M,N) f32, tiled & pipelined on the MXU."""
    M, K = x.shape
    N = w.shape[1]
    bm = M if M <= tm else tm          # full-dim block when small (legal),
    bn = N if N <= tn else tn          # 128/256-aligned tile when large.
    bk = K if K <= tk else tk
    Mp, Np, Kp = _round_up(M, bm), _round_up(N, bn), _round_up(K, bk)
    xp = x if (Mp == M and Kp == K) else jnp.pad(x, ((0, Mp - M), (0, Kp - K)))
    wp = w if (Kp == K and Np == N) else jnp.pad(w, ((0, Kp - K), (0, Np - N)))
    bp = (b if Np == N else jnp.pad(b, (0, Np - N))).reshape(1, Np)

    out = pl.pallas_call(
        _matmul_kernel,
        grid=(Mp // bm, Np // bn, Kp // bk),
        in_specs=[pl.BlockSpec((bm, bk), lambda i, j, k: (i, k)),
                  pl.BlockSpec((bk, bn), lambda i, j, k: (k, j)),
                  pl.BlockSpec((1, bn), lambda i, j, k: (0, j))],
        out_specs=pl.BlockSpec((bm, bn), lambda i, j, k: (i, j)),
        out_shape=jax.ShapeDtypeStruct((Mp, Np), jnp.float32),
        scratch_shapes=[pltpu.VMEM((bm, bn), jnp.float32)],
        compiler_params=pltpu.CompilerParams(
            dimension_semantics=("parallel", "parallel", "arbitrary"),
            vmem_limit_bytes=48 * 1024 * 1024),
    )(xp, wp, bp)
    return out[:M, :N]


# --------------------- fused attention building blocks ----------------------

def _layernorm(z, gamma, beta, eps=1e-5):
    mu = jnp.mean(z, axis=-1, keepdims=True)
    var = jnp.mean(jnp.square(z - mu), axis=-1, keepdims=True)
    return (z - mu) * jax.lax.rsqrt(var + eps) * gamma + beta


def _attn_compute(x, wqkv, bqkv, wout, bout, n_head, causal, scale):
    """Multi-head self attention on one (S, D) block.

    wqkv: (3, D, D)   fused Q / K / V projections (all heads per group)
    bqkv: (3, 1, D)
    wout: (H, dh, D)  per-head slice of the output projection
    bout: (1, D)
    """
    S, D = x.shape
    dh = D // n_head
    xb = x.astype(jnp.bfloat16)
    # One MXU matmul per group (all heads fused) — full contraction depth and
    # lane width, instead of 3*H narrow (S,D)@(D,dh) matmuls.
    q = jnp.dot(xb, wqkv[0].astype(jnp.bfloat16),
                preferred_element_type=jnp.float32) + bqkv[0]
    k = jnp.dot(xb, wqkv[1].astype(jnp.bfloat16),
                preferred_element_type=jnp.float32) + bqkv[1]
    v = jnp.dot(xb, wqkv[2].astype(jnp.bfloat16),
                preferred_element_type=jnp.float32) + bqkv[2]

    if causal:
        row = jax.lax.broadcasted_iota(jnp.int32, (S, S), 0)
        col = jax.lax.broadcasted_iota(jnp.int32, (S, S), 1)

    acc = jnp.zeros((S, D), jnp.float32)
    for h in range(n_head):                       # unrolled at trace time
        sl = slice(h * dh, (h + 1) * dh)          # static lane slice
        qh = q[:, sl].astype(jnp.bfloat16)
        kh = k[:, sl].astype(jnp.bfloat16)
        vh = v[:, sl].astype(jnp.bfloat16)
        s = jnp.einsum('qe,ke->qk', qh, kh,
                       preferred_element_type=jnp.float32) * scale
        if causal:
            s = jnp.where(col > row, jnp.float32(-1e30), s)
        s = s - jnp.max(s, axis=-1, keepdims=True)
        p = jnp.exp(s)
        p = p * pl.reciprocal(jnp.sum(p, axis=-1, keepdims=True), approx=True)
        o_h = jnp.dot(p.astype(jnp.bfloat16), vh,
                      preferred_element_type=jnp.float32)
        # out-projection accumulated per head: concat_h(o_h) @ W_out
        acc = acc + jnp.dot(o_h.astype(jnp.bfloat16),
                            wout[h].astype(jnp.bfloat16),
                            preferred_element_type=jnp.float32)
    return acc + bout
    # TODO(synk): for long sequences, tile the KV axis with online softmax
    # (flash-style) so the (S,S) scores never exceed VMEM.


def _mha_ln_kernel(x_ref, wqkv_ref, bqkv_ref, wout_ref, bout_ref,
                   g_ref, b_ref, o_ref, *, n_head, causal, scale):
    """LayerNorm(x + MHA(x)) for one batch element, fully fused."""
    x = x_ref[0]                                   # (S, D)
    proj = _attn_compute(x, wqkv_ref[...], bqkv_ref[...],
                         wout_ref[...], bout_ref[...], n_head, causal, scale)
    o_ref[0] = _layernorm(x + proj, g_ref[...], b_ref[...])


def _moae_expert_ln_kernel(x_ref, gate_ref, wqkv_ref, bqkv_ref, wout_ref,
                           bout_ref, g_ref, b_ref, o_ref, acc_ref,
                           *, n_head, causal, scale):
    """Accumulate gate_e * expert_attention_e(x) over the expert grid axis,
    then LayerNorm(x + sum) at the last expert step (no (E,B,S,D) stack)."""
    e = pl.program_id(1)

    @pl.when(e == 0)
    def _():
        acc_ref[...] = jnp.zeros_like(acc_ref)

    x = x_ref[0]                                   # (S, D)
    proj = _attn_compute(x, wqkv_ref[0], bqkv_ref[0],
                         wout_ref[0], bout_ref[0], n_head, causal, scale)
    gate = gate_ref[0, 0]                          # (S, 1)
    acc_ref[...] += gate * proj

    @pl.when(e == pl.num_programs(1) - 1)
    def _():
        o_ref[0] = _layernorm(x + acc_ref[...], g_ref[...], b_ref[...])


# ------------------------------ model pieces -------------------------------

def fused_attention_block(x, w_qkv, b_qkv, w_out, b_out, ln_g, ln_b,
                          n_head, causal):
    """LayerNorm(x + MultiheadAttention(x, x, x)) in one pallas_call."""
    B, S, D = x.shape
    dh = D // n_head
    # pre-reshape weights outside the kernel: (D, 3D) -> (3, D, D)
    wqkv_g = w_qkv.reshape(D, 3, D).transpose(1, 0, 2)
    bqkv_g = b_qkv.reshape(3, 1, D)
    wout_h = w_out.reshape(n_head, dh, D)
    bout_h = b_out.reshape(1, D)

    kern = functools.partial(_mha_ln_kernel, n_head=n_head, causal=causal,
                             scale=1.0 / math.sqrt(dh))
    return pl.pallas_call(
        kern,
        grid=(B,),
        in_specs=[pl.BlockSpec((1, S, D), lambda b: (b, 0, 0)),
                  pl.BlockSpec((3, D, D), lambda b: (0, 0, 0)),
                  pl.BlockSpec((3, 1, D), lambda b: (0, 0, 0)),
                  pl.BlockSpec((n_head, dh, D), lambda b: (0, 0, 0)),
                  pl.BlockSpec((1, D), lambda b: (0, 0)),
                  pl.BlockSpec((1, D), lambda b: (0, 0)),
                  pl.BlockSpec((1, D), lambda b: (0, 0))],
        out_specs=pl.BlockSpec((1, S, D), lambda b: (b, 0, 0)),
        out_shape=jax.ShapeDtypeStruct((B, S, D), jnp.float32),
        compiler_params=pltpu.CompilerParams(
            dimension_semantics=("parallel",)),
    )(x, wqkv_g, bqkv_g, wout_h, bout_h,
      ln_g.reshape(1, D), ln_b.reshape(1, D))


def moae_layer(x, lp, cfg):
    """Mixture-of-attention-experts block, fused with residual + LayerNorm."""
    B, S, D = x.shape
    E, top_n, H = cfg['experts'], cfg['top_n'], cfg['n_head_moe']
    N = B * S
    dh = D // H
    xf = x.reshape(N, D)

    # router (tiny matmul) + gating in plain JAX
    logits = tiled_linear(xf, lp['router_w'], lp['router_b'])       # (N, E)
    probs = jax.nn.softmax(logits, axis=-1)
    # TODO(synk): MoAE source not provided; capacity-factor token dropping and
    # straight-through dispatch are approximated by dense soft top-n dispatch.
    _, top_idx = jax.lax.top_k(probs, top_n)
    sel = jnp.sum(jax.nn.one_hot(top_idx, E, dtype=jnp.float32), axis=1)
    gates = probs * sel                                             # (N, E)
    gates_e = gates.T.reshape(E, B, S, 1)

    # expert weights pre-reshaped outside the kernel
    wqkv_g = lp['e_w_qkv'].reshape(E, D, 3, D).transpose(0, 2, 1, 3)  # (E,3,D,D)
    bqkv_g = lp['e_b_qkv'].reshape(E, 3, 1, D)
    wout_h = lp['e_w_out'].reshape(E, H, dh, D)
    bout_h = lp['e_b_out'].reshape(E, 1, D)

    kern = functools.partial(_moae_expert_ln_kernel, n_head=H, causal=False,
                             scale=1.0 / math.sqrt(dh))
    out = pl.pallas_call(
        kern,
        grid=(B, E),                                # E = reduction axis
        in_specs=[pl.BlockSpec((1, S, D), lambda b, e: (b, 0, 0)),
                  pl.BlockSpec((1, 1, S, 1), lambda b, e: (e, b, 0, 0)),
                  pl.BlockSpec((1, 3, D, D), lambda b, e: (e, 0, 0, 0)),
                  pl.BlockSpec((1, 3, 1, D), lambda b, e: (e, 0, 0, 0)),
                  pl.BlockSpec((1, H, dh, D), lambda b, e: (e, 0, 0, 0)),
                  pl.BlockSpec((1, 1, D), lambda b, e: (e, 0, 0)),
                  pl.BlockSpec((1, D), lambda b, e: (0, 0)),
                  pl.BlockSpec((1, D), lambda b, e: (0, 0))],
        out_specs=pl.BlockSpec((1, S, D), lambda b, e: (b, 0, 0)),
        out_shape=jax.ShapeDtypeStruct((B, S, D), jnp.float32),
        scratch_shapes=[pltpu.VMEM((S, D), jnp.float32)],
        compiler_params=pltpu.CompilerParams(
            dimension_semantics=("parallel", "arbitrary")),
    )(x, gates_e, wqkv_g, bqkv_g, wout_h, bout_h,
      lp['ln2_g'].reshape(1, D), lp['ln2_b'].reshape(1, D))

    # aux losses: switch-style balance loss + router z-loss
    density = jnp.mean(sel, axis=0) / top_n
    density_proxy = jnp.mean(probs, axis=0)
    balance_loss = 0.01 * E * jnp.sum(density * density_proxy)
    z_loss = 0.001 * jnp.mean(jax.nn.logsumexp(logits, axis=-1) ** 2)
    return out, balance_loss + z_loss


def moae_transformer_forward(params, tokens, cfg):
    B, S = tokens.shape
    D = cfg['d_model']
    x = params['emb'][tokens] + params['pos'][:S][None, :, :]      # (B, S, D)

    total_aux = jnp.zeros((), jnp.float32)
    for lp in params['layers']:
        # fused: QKV proj + causal MHA + out proj + residual + LayerNorm1
        x = fused_attention_block(x, lp['w_qkv'], lp['b_qkv'],
                                  lp['w_out'], lp['b_out'],
                                  lp['ln1_g'], lp['ln1_b'],
                                  cfg['n_head'], causal=True)
        # fused: router-gated expert attention + residual + LayerNorm2
        x, aux = moae_layer(x, lp, cfg)
        total_aux = total_aux + aux

    logits = tiled_linear(x.reshape(B * S, D), params['head_w'],
                          params['head_b'])
    return logits.reshape(B, S, cfg['vocab_size']), total_aux


# ------------------------------- parameters --------------------------------

def init_params(key, cfg):
    D, V, E = cfg['d_model'], cfg['vocab_size'], cfg['experts']

    def nrm(k, shape, scale=0.02):
        return scale * jax.random.normal(k, shape, jnp.float32)

    keys = jax.random.split(key, 4 + cfg['n_layers'])
    params = {
        'emb': nrm(keys[0], (V, D)),
        'pos': nrm(keys[1], (cfg['max_len'], D)),
        'head_w': nrm(keys[2], (D, V)),
        'head_b': jnp.zeros((V,), jnp.float32),
        'layers': [],
    }
    for li in range(cfg['n_layers']):
        lk = jax.random.split(keys[4 + li], 5)
        params['layers'].append({
            'w_qkv': nrm(lk[0], (D, 3 * D)),
            'b_qkv': jnp.zeros((3 * D,), jnp.float32),
            'w_out': nrm(lk[1], (D, D)),
            'b_out': jnp.zeros((D,), jnp.float32),
            'ln1_g': jnp.ones((D,), jnp.float32),
            'ln1_b': jnp.zeros((D,), jnp.float32),
            'ln2_g': jnp.ones((D,), jnp.float32),
            'ln2_b': jnp.zeros((D,), jnp.float32),
            'router_w': nrm(lk[2], (D, E)),
            'router_b': jnp.zeros((E,), jnp.float32),
            'e_w_qkv': nrm(lk[3], (E, D, 3 * D)),
            'e_b_qkv': jnp.zeros((E, 3 * D), jnp.float32),
            'e_w_out': nrm(lk[4], (E, D, D)),
            'e_b_out': jnp.zeros((E, D), jnp.float32),
        })
    return params


# ---------------------------------- main ------------------------------------

if __name__ == "__main__":
    cfg = dict(vocab_size=64, d_model=32, max_len=16, n_head=4, n_head_moe=2,
               experts=4, top_n=2, n_layers=2, dropout=0.0)
    B, S = 2, 8

    root = jax.random.PRNGKey(0)
    k_params, k_tokens = jax.random.split(root)
    params = init_params(k_params, cfg)
    tokens = jax.random.randint(k_tokens, (B, S), 0, cfg['vocab_size'],
                                dtype=jnp.int32)

    fwd = jax.jit(lambda p, t: moae_transformer_forward(p, t, cfg))
    logits, total_aux = fwd(params, tokens)
    jax.block_until_ready((logits, total_aux))

    assert logits.shape == (B, S, cfg['vocab_size'])
    assert total_aux.shape == ()
    assert bool(jnp.all(jnp.isfinite(logits)))
    print("KERNEL_OK")
</pallas_src>

<mosaic_0001>
module attributes {stable_mosaic.version = 11 : i64} {
  func.func @_matmul_kernel(%arg0: i32, %arg1: i32, %arg2: i32, %arg3: memref<16x32xf32, #tpu.memory_space<vmem>>, %arg4: memref<32x4xf32, #tpu.memory_space<vmem>>, %arg5: memref<1x4xf32, #tpu.memory_space<vmem>>, %arg6: memref<16x4xf32, #tpu.memory_space<vmem>>, %arg7: memref<16x4xf32, #tpu.memory_space<vmem>>) attributes {dimension_semantics = [#tpu.dimension_semantics<parallel>, #tpu.dimension_semantics<parallel>, #tpu.dimension_semantics<arbitrary>], iteration_bounds = array<i64: 1, 1, 1>, scalar_prefetch = 0 : i64, scratch_operands = 1 : i64, tpu.core_type = #tpu.core_type<tc>, window_params = [{transform_indices = @transform_0, window_bounds = array<i64: 16, 32>}, {transform_indices = @transform_1, window_bounds = array<i64: 32, 4>}, {transform_indices = @transform_2, window_bounds = array<i64: 1, 4>}, {transform_indices = @transform_3, window_bounds = array<i64: 16, 4>}]} {
    %c0_i32 = arith.constant 0 : i32
    %0 = arith.cmpi eq, %arg2, %c0_i32 : i32
    %1 = arith.extui %0 : i1 to i32
    %c0_i32_0 = arith.constant 0 : i32
    %2 = arith.cmpi ne, %1, %c0_i32_0 : i32
    scf.if %2 {
      %cst_10 = arith.constant 0.000000e+00 : f32
      %14 = vector.broadcast %cst_10 : f32 to vector<16x4xf32>
      %c0_11 = arith.constant 0 : index
      %c0_12 = arith.constant 0 : index
      %15 = vector.load %arg7[%c0_11, %c0_12] : memref<16x4xf32, #tpu.memory_space<vmem>>, vector<16x4xf32>
      tpu.vector_store %arg7[%c0_11, %c0_12], %14 {strides = array<i32>} : memref<16x4xf32, #tpu.memory_space<vmem>>, vector<16x4xf32>,
    } else {
    }
    %c0 = arith.constant 0 : index
    %c0_1 = arith.constant 0 : index
    %3 = vector.load %arg7[%c0, %c0_1] : memref<16x4xf32, #tpu.memory_space<vmem>>, vector<16x4xf32>
    %c0_2 = arith.constant 0 : index
    %c0_3 = arith.constant 0 : index
    %4 = vector.load %arg3[%c0_2, %c0_3] : memref<16x32xf32, #tpu.memory_space<vmem>>, vector<16x32xf32>
    %5 = arith.truncf %4 : vector<16x32xf32> to vector<16x32xbf16>
    %c0_4 = arith.constant 0 : index
    %c0_5 = arith.constant 0 : index
    %6 = vector.load %arg4[%c0_4, %c0_5] : memref<32x4xf32, #tpu.memory_space<vmem>>, vector<32x4xf32>
    %7 = arith.truncf %6 : vector<32x4xf32> to vector<32x4xbf16>
    %cst = arith.constant dense<0.000000e+00> : vector<16x4xf32>
    %8 = tpu.matmul %5, %7, %cst {dimension_numbers = #tpu.dot_dimension_numbers<[1], [0], [0], [1], [0, 0, 1, 1], [], []>} : vector<16x32xbf16>, vector<32x4xbf16>, vector<16x4xf32> -> vector<16x4xf32>
    %9 = arith.addf %3, %8 : vector<16x4xf32>
    %c0_6 = arith.constant 0 : index
    %c0_7 = arith.constant 0 : index
    %10 = vector.load %arg7[%c0_6, %c0_7] : memref<16x4xf32, #tpu.memory_space<vmem>>, vector<16x4xf32>
    tpu.vector_store %arg7[%c0_6, %c0_7], %9 {strides = array<i32>} : memref<16x4xf32, #tpu.memory_space<vmem>>, vector<16x4xf32>,
    %c0_i32_8 = arith.constant 0 : i32
    %11 = arith.cmpi eq, %arg2, %c0_i32_8 : i32
    %12 = arith.extui %11 : i1 to i32
    %c0_i32_9 = arith.constant 0 : i32
    %13 = arith.cmpi ne, %12, %c0_i32_9 : i32
    scf.if %13 {
      %c0_10 = arith.constant 0 : index
      %c0_11 = arith.constant 0 : index
      %14 = vector.load %arg7[%c0_10, %c0_11] : memref<16x4xf32, #tpu.memory_space<vmem>>, vector<16x4xf32>
      %c0_12 = arith.constant 0 : index
      %c0_13 = arith.constant 0 : index
      %15 = vector.load %arg5[%c0_12, %c0_13] : memref<1x4xf32, #tpu.memory_space<vmem>>, vector<1x4xf32>
      %16 = vector.broadcast %15 : vector<1x4xf32> to vector<16x4xf32>
      %17 = arith.addf %14, %16 : vector<16x4xf32>
      %c0_14 = arith.constant 0 : index
      %c0_15 = arith.constant 0 : index
      %18 = vector.load %arg6[%c0_14, %c0_15] : memref<16x4xf32, #tpu.memory_space<vmem>>, vector<16x4xf32>
      tpu.vector_store %arg6[%c0_14, %c0_15], %17 {strides = array<i32>} : memref<16x4xf32, #tpu.memory_space<vmem>>, vector<16x4xf32>,
    } else {
    }
    return
  }
  func.func @transform_0(%arg0: i32, %arg1: i32, %arg2: i32) -> (i32, i32) {
    %c0_i32 = arith.constant 0 : i32
    return %arg0, %arg2 : i32, i32
  }
  func.func @transform_1(%arg0: i32, %arg1: i32, %arg2: i32) -> (i32, i32) {
    %c0_i32 = arith.constant 0 : i32
    return %arg2, %arg1 : i32, i32
  }
  func.func @transform_2(%arg0: i32, %arg1: i32, %arg2: i32) -> (i32, i32) {
    %c0_i32 = arith.constant 0 : i32
    %c0_i32_0 = arith.constant 0 : i32
    return %c0_i32, %arg1 : i32, i32
  }
  func.func @transform_3(%arg0: i32, %arg1: i32, %arg2: i32) -> (i32, i32) {
    %c0_i32 = arith.constant 0 : i32
    return %arg0, %arg1 : i32, i32
  }
}

module attributes {stable_mosaic.version = 11 : i64} {
  func.func @_mha_ln_kernel(%arg0: i32, %arg1: memref<1x8x32xf32, #tpu.memory_space<vmem>>, %arg2: memref<3x32x32xf32, #tpu.memory_space<vmem>>, %arg3: memref<3x1x32xf32, #tpu.memory_space<vmem>>, %arg4: memref<4x8x32xf32, #tpu.memory_space<vmem>>, %arg5: memref<1x32xf32, #tpu.memory_space<vmem>>, %arg6: memref<1x32xf32, #tpu.memory_space<vmem>>, %arg7: memref<1x32xf32, #tpu.memory_space<vmem>>, %arg8: memref<1x8x32xf32, #tpu.memory_space<vmem>>) attributes {dimension_semantics = [#tpu.dimension_semantics<parallel>], iteration_bounds = array<i64: 2>, scalar_prefetch = 0 : i64, scratch_operands = 0 : i64, tpu.core_type = #tpu.core_type<tc>, window_params = [{transform_indices = @transform_0, window_bounds = array<i64: 1, 8, 32>}, {pipeline_mode = #tpu.pipeline_mode<synchronous>, transform_indices = @transform_1, window_bounds = array<i64: 3, 32, 32>}, {pipeline_mode = #tpu.pipeline_mode<synchronous>, transform_indices = @transform_2, window_bounds = array<i64: 3, 1, 32>}, {pipeline_mode = #tpu.pipeline_mode<synchronous>, transform_indices = @transform_3, window_bounds = array<i64: 4, 8, 32>}, {pipeline_mode = #tpu.pipeline_mode<synchronous>, transform_indices = @transform_4, window_bounds = array<i64: 1, 32>}, {pipeline_mode = #tpu.pipeline_mode<synchronous>, transform_indices = @transform_5, window_bounds = array<i64: 1, 32>}, {pipeline_mode = #tpu.pipeline_mode<synchronous>, transform_indices = @transform_6, window_bounds = array<i64: 1, 32>}, {transform_indices = @transform_7, window_bounds = array<i64: 1, 8, 32>}]} {
    %c0 = arith.constant 0 : index
    %c0_0 = arith.constant 0 : index
    %c0_1 = arith.constant 0 : index
    %0 = vector.load %arg1[%c0, %c0_0, %c0_1] : memref<1x8x32xf32, #tpu.memory_space<vmem>>, vector<1x8x32xf32>
    %1 = vector.shape_cast %0 : vector<1x8x32xf32> to vector<8x32xf32>
    %c0_2 = arith.constant 0 : index
    %c0_3 = arith.constant 0 : index
    %c0_4 = arith.constant 0 : index
    %2 = vector.load %arg2[%c0_2, %c0_3, %c0_4] : memref<3x32x32xf32, #tpu.memory_space<vmem>>, vector<3x32x32xf32>
    %c0_5 = arith.constant 0 : index
    %c0_6 = arith.constant 0 : index
    %c0_7 = arith.constant 0 : index
    %3 = vector.load %arg3[%c0_5, %c0_6, %c0_7] : memref<3x1x32xf32, #tpu.memory_space<vmem>>, vector<3x1x32xf32>
    %c0_8 = arith.constant 0 : index
    %c0_9 = arith.constant 0 : index
    %c0_10 = arith.constant 0 : index
    %4 = vector.load %arg4[%c0_8, %c0_9, %c0_10] : memref<4x8x32xf32, #tpu.memory_space<vmem>>, vector<4x8x32xf32>
    %c0_11 = arith.constant 0 : index
    %c0_12 = arith.constant 0 : index
    %5 = vector.load %arg5[%c0_11, %c0_12] : memref<1x32xf32, #tpu.memory_space<vmem>>, vector<1x32xf32>
    %6 = arith.truncf %1 : vector<8x32xf32> to vector<8x32xbf16>
    %7 = vector.extract_strided_slice %2 {offsets = [0, 0, 0], sizes = [1, 32, 32], strides = [1, 1, 1]} : vector<3x32x32xf32> to vector<1x32x32xf32>
    %8 = vector.shape_cast %7 : vector<1x32x32xf32> to vector<32x32xf32>
    %9 = arith.truncf %8 : vector<32x32xf32> to vector<32x32xbf16>
    %cst = arith.constant dense<0.000000e+00> : vector<8x32xf32>
    %10 = tpu.matmul %6, %9, %cst {dimension_numbers = #tpu.dot_dimension_numbers<[1], [0], [0], [1], [0, 0, 1, 1], [], []>} : vector<8x32xbf16>, vector<32x32xbf16>, vector<8x32xf32> -> vector<8x32xf32>
    %11 = vector.extract_strided_slice %3 {offsets = [0, 0, 0], sizes = [1, 1, 32], strides = [1, 1, 1]} : vector<3x1x32xf32> to vector<1x1x32xf32>
    %12 = vector.shape_cast %11 : vector<1x1x32xf32> to vector<1x32xf32>
    %13 = vector.broadcast %12 : vector<1x32xf32> to vector<8x32xf32>
    %14 = arith.addf %10, %13 : vector<8x32xf32>
    %15 = vector.extract_strided_slice %2 {offsets = [1, 0, 0], sizes = [1, 32, 32], strides = [1, 1, 1]} : vector<3x32x32xf32> to vector<1x32x32xf32>
    %16 = vector.shape_cast %15 : vector<1x32x32xf32> to vector<32x32xf32>
    %17 = arith.truncf %16 : vector<32x32xf32> to vector<32x32xbf16>
    %cst_13 = arith.constant dense<0.000000e+00> : vector<8x32xf32>
    %18 = tpu.matmul %6, %17, %cst_13 {dimension_numbers = #tpu.dot_dimension_numbers<[1], [0], [0], [1], [0, 0, 1, 1], [], []>} : vector<8x32xbf16>, vector<32x32xbf16>, vector<8x32xf32> -> vector<8x32xf32>
    %19 = vector.extract_strided_slice %3 {offsets = [1, 0, 0], sizes = [1, 1, 32], strides = [1, 1, 1]} : vector<3x1x32xf32> to vector<1x1x32xf32>
    %20 = vector.shape_cast %19 : vector<1x1x32xf32> to vector<1x32xf32>
    %21 = vector.broadcast %20 : vector<1x32xf32> to vector<8x32xf32>
    %22 = arith.addf %18, %21 : vector<8x32xf32>
    %23 = vector.extract_strided_slice %2 {offsets = [2, 0, 0], sizes = [1, 32, 32], strides = [1, 1, 1]} : vector<3x32x32xf32> to vector<1x32x32xf32>
    %24 = vector.shape_cast %23 : vector<1x32x32xf32> to vector<32x32xf32>
    %25 = arith.truncf %24 : vector<32x32xf32> to vector<32x32xbf16>
    %cst_14 = arith.constant dense<0.000000e+00> : vector<8x32xf32>
    %26 = tpu.matmul %6, %25, %cst_14 {dimension_numbers = #tpu.dot_dimension_numbers<[1], [0], [0], [1], [0, 0, 1, 1], [], []>} : vector<8x32xbf16>, vector<32x32xbf16>, vector<8x32xf32> -> vector<8x32xf32>
    %27 = vector.extract_strided_slice %3 {offsets = [2, 0, 0], sizes = [1, 1, 32], strides = [1, 1, 1]} : vector<3x1x32xf32> to vector<1x1x32xf32>
    %28 = vector.shape_cast %27 : vector<1x1x32xf32> to vector<1x32xf32>
    %29 = vector.broadcast %28 : vector<1x32xf32> to vector<8x32xf32>
    %30 = arith.addf %26, %29 : vector<8x32xf32>
    %31 = tpu.iota {dimensions = array<i32: 0>} : vector<8x8xi32>
    %32 = tpu.iota {dimensions = array<i32: 1>} : vector<8x8xi32>
    %cst_15 = arith.constant 0.000000e+00 : f32
    %33 = vector.broadcast %cst_15 : f32 to vector<8x32xf32>
    %34 = vector.extract_strided_slice %14 {offsets = [0, 0], sizes = [8, 8], strides = [1, 1]} : vector<8x32xf32> to vector<8x8xf32>
    %35 = arith.truncf %34 : vector<8x8xf32> to vector<8x8xbf16>
    %36 = vector.extract_strided_slice %22 {offsets = [0, 0], sizes = [8, 8], strides = [1, 1]} : vector<8x32xf32> to vector<8x8xf32>
    %37 = arith.truncf %36 : vector<8x8xf32> to vector<8x8xbf16>
    %38 = vector.extract_strided_slice %30 {offsets = [0, 0], sizes = [8, 8], strides = [1, 1]} : vector<8x32xf32> to vector<8x8xf32>
    %39 = arith.truncf %38 : vector<8x8xf32> to vector<8x8xbf16>
    "tpu.trace_start"() <{level = 10 : i32, message = "qe,ke->qk"}> : () -> ()
    %cst_16 = arith.constant dense<0.000000e+00> : vector<8x8xf32>
    %40 = tpu.matmul %35, %37, %cst_16 {dimension_numbers = #tpu.dot_dimension_numbers<[1], [1], [0], [0], [0, 0, 1, 0], [], []>} : vector<8x8xbf16>, vector<8x8xbf16>, vector<8x8xf32> -> vector<8x8xf32>
    "tpu.trace_stop"() : () -> ()
    %cst_17 = arith.constant 0.353553385 : f32
    %41 = vector.broadcast %cst_17 : f32 to vector<8x8xf32>
    %42 = arith.mulf %40, %41 : vector<8x8xf32>
    %43 = arith.cmpi sgt, %32, %31 : vector<8x8xi32>
    %cst_18 = arith.constant -1.000000e+30 : f32
    %44 = vector.broadcast %cst_18 : f32 to vector<8x8xf32>
    %45 = arith.select %43, %44, %42 : vector<8x8xi1>, vector<8x8xf32>
    %cst_19 = arith.constant dense<0xFF800000> : vector<8xf32>
    %46 = vector.multi_reduction <maximumf>, %45, %cst_19 [1] : vector<8x8xf32> to vector<8xf32>
    %47 = vector.shape_cast %46 : vector<8xf32> to vector<8x1xf32>
    %48 = vector.broadcast %47 : vector<8x1xf32> to vector<8x8xf32>
    %49 = arith.subf %45, %48 : vector<8x8xf32>
    %50 = math.exp %49 : vector<8x8xf32>
    %cst_20 = arith.constant dense<0.000000e+00> : vector<8xf32>
    %51 = vector.multi_reduction <add>, %50, %cst_20 [1] : vector<8x8xf32> to vector<8xf32>
    %52 = vector.shape_cast %51 : vector<8xf32> to vector<8x1xf32>
    %53 = tpu.reciprocal %52 {approx = true} : vector<8x1xf32> -> vector<8x1xf32>
    %54 = vector.broadcast %53 : vector<8x1xf32> to vector<8x8xf32>
    %55 = arith.mulf %50, %54 : vector<8x8xf32>
    %56 = arith.truncf %55 : vector<8x8xf32> to vector<8x8xbf16>
    %cst_21 = arith.constant dense<0.000000e+00> : vector<8x8xf32>
    %57 = tpu.matmul %56, %39, %cst_21 {dimension_numbers = #tpu.dot_dimension_numbers<[1], [0], [0], [1], [0, 0, 1, 1], [], []>} : vector<8x8xbf16>, vector<8x8xbf16>, vector<8x8xf32> -> vector<8x8xf32>
    %58 = arith.truncf %57 : vector<8x8xf32> to vector<8x8xbf16>
    %59 = vector.extract_strided_slice %4 {offsets = [0, 0, 0], sizes = [1, 8, 32], strides = [1, 1, 1]} : vector<4x8x32xf32> to vector<1x8x32xf32>
    %60 = vector.shape_cast %59 : vector<1x8x32xf32> to vector<8x32xf32>
    %61 = arith.truncf %60 : vector<8x32xf32> to vector<8x32xbf16>
    %cst_22 = arith.constant dense<0.000000e+00> : vector<8x32xf32>
    %62 = tpu.matmul %58, %61, %cst_22 {dimension_numbers = #tpu.dot_dimension_numbers<[1], [0], [0], [1], [0, 0, 1, 1], [], []>} : vector<8x8xbf16>, vector<8x32xbf16>, vector<8x32xf32> -> vector<8x32xf32>
    %63 = arith.addf %33, %62 : vector<8x32xf32>
    %64 = vector.extract_strided_slice %14 {offsets = [0, 8], sizes = [8, 8], strides = [1, 1]} : vector<8x32xf32> to vector<8x8xf32>
    %65 = arith.truncf %64 : vector<8x8xf32> to vector<8x8xbf16>
    %66 = vector.extract_strided_slice %22 {offsets = [0, 8], sizes = [8, 8], strides = [1, 1]} : vector<8x32xf32> to vector<8x8xf32>
    %67 = arith.truncf %66 : vector<8x8xf32> to vector<8x8xbf16>
    %68 = vector.extract_strided_slice %30 {offsets = [0, 8], sizes = [8, 8], strides = [1, 1]} : vector<8x32xf32> to vector<8x8xf32>
    %69 = arith.truncf %68 : vector<8x8xf32> to vector<8x8xbf16>
    "tpu.trace_start"() <{level = 10 : i32, message = "qe,ke->qk"}> : () -> ()
    %cst_23 = arith.constant dense<0.000000e+00> : vector<8x8xf32>
    %70 = tpu.matmul %65, %67, %cst_23 {dimension_numbers = #tpu.dot_dimension_numbers<[1], [1], [0], [0], [0, 0, 1, 0], [], []>} : vector<8x8xbf16>, vector<8x8xbf16>, vector<8x8xf32> -> vector<8x8xf32>
    "tpu.trace_stop"() : () -> ()
    %cst_24 = arith.constant 0.353553385 : f32
    %71 = vector.broadcast %cst_24 : f32 to vector<8x8xf32>
    %72 = arith.mulf %70, %71 : vector<8x8xf32>
    %73 = arith.cmpi sgt, %32, %31 : vector<8x8xi32>
    %cst_25 = arith.constant -1.000000e+30 : f32
    %74 = vector.broadcast %cst_25 : f32 to vector<8x8xf32>
    %75 = arith.select %73, %74, %72 : vector<8x8xi1>, vector<8x8xf32>
    %cst_26 = arith.constant dense<0xFF800000> : vector<8xf32>
    %76 = vector.multi_reduction <maximumf>, %75, %cst_26 [1] : vector<8x8xf32> to vector<8xf32>
    %77 = vector.shape_cast %76 : vector<8xf32> to vector<8x1xf32>
    %78 = vector.broadcast %77 : vector<8x1xf32> to vector<8x8xf32>
    %79 = arith.subf %75, %78 : vector<8x8xf32>
    %80 = math.exp %79 : vector<8x8xf32>
    %cst_27 = arith.constant dense<0.000000e+00> : vector<8xf32>
    %81 = vector.multi_reduction <add>, %80, %cst_27 [1] : vector<8x8xf32> to vector<8xf32>
    %82 = vector.shape_cast %81 : vector<8xf32> to vector<8x1xf32>
    %83 = tpu.reciprocal %82 {approx = true} : vector<8x1xf32> -> vector<8x1xf32>
    %84 = vector.broadcast %83 : vector<8x1xf32> to vector<8x8xf32>
    %85 = arith.mulf %80, %84 : vector<8x8xf32>
    %86 = arith.truncf %85 : vector<8x8xf32> to vector<8x8xbf16>
    %cst_28 = arith.constant dense<0.000000e+00> : vector<8x8xf32>
    %87 = tpu.matmul %86, %69, %cst_28 {dimension_numbers = #tpu.dot_dimension_numbers<[1], [0], [0], [1], [0, 0, 1, 1], [], []>} : vector<8x8xbf16>, vector<8x8xbf16>, vector<8x8xf32> -> vector<8x8xf32>
    %88 = arith.truncf %87 : vector<8x8xf32> to vector<8x8xbf16>
    %89 = vector.extract_strided_slice %4 {offsets = [1, 0, 0], sizes = [1, 8, 32], strides = [1, 1, 1]} : vector<4x8x32xf32> to vector<1x8x32xf32>
    %90 = vector.shape_cast %89 : vector<1x8x32xf32> to vector<8x32xf32>
    %91 = arith.truncf %90 : vector<8x32xf32> to vector<8x32xbf16>
    %cst_29 = arith.constant dense<0.000000e+00> : vector<8x32xf32>
    %92 = tpu.matmul %88, %91, %cst_29 {dimension_numbers = #tpu.dot_dimension_numbers<[1], [0], [0], [1], [0, 0, 1, 1], [], []>} : vector<8x8xbf16>, vector<8x32xbf16>, vector<8x32xf32> -> vector<8x32xf32>
    %93 = arith.addf %63, %92 : vector<8x32xf32>
    %94 = vector.extract_strided_slice %14 {offsets = [0, 16], sizes = [8, 8], strides = [1, 1]} : vector<8x32xf32> to vector<8x8xf32>
    %95 = arith.truncf %94 : vector<8x8xf32> to vector<8x8xbf16>
    %96 = vector.extract_strided_slice %22 {offsets = [0, 16], sizes = [8, 8], strides = [1, 1]} : vector<8x32xf32> to vector<8x8xf32>
    %97 = arith.truncf %96 : vector<8x8xf32> to vector<8x8xbf16>
    %98 = vector.extract_strided_slice %30 {offsets = [0, 16], sizes = [8, 8], strides = [1, 1]} : vector<8x32xf32> to vector<8x8xf32>
    %99 = arith.truncf %98 : vector<8x8xf32> to vector<8x8xbf16>
    "tpu.trace_start"() <{level = 10 : i32, message = "qe,ke->qk"}> : () -> ()
    %cst_30 = arith.constant dense<0.000000e+00> : vector<8x8xf32>
    %100 = tpu.matmul %95, %97, %cst_30 {dimension_numbers = #tpu.dot_dimension_numbers<[1], [1], [0], [0], [0, 0, 1, 0], [], []>} : vector<8x8xbf16>, vector<8x8xbf16>, vector<8x8xf32> -> vector<8x8xf32>
    "tpu.trace_stop"() : () -> ()
    %cst_31 = arith.constant 0.353553385 : f32
    %101 = vector.broadcast %cst_31 : f32 to vector<8x8xf32>
    %102 = arith.mulf %100, %101 : vector<8x8xf32>
    %103 = arith.cmpi sgt, %32, %31 : vector<8x8xi32>
    %cst_32 = arith.constant -1.000000e+30 : f32
    %104 = vector.broadcast %cst_32 : f32 to vector<8x8xf32>
    %105 = arith.select %103, %104, %102 : vector<8x8xi1>, vector<8x8xf32>
    %cst_33 = arith.constant dense<0xFF800000> : vector<8xf32>
    %106 = vector.multi_reduction <maximumf>, %105, %cst_33 [1] : vector<8x8xf32> to vector<8xf32>
    %107 = vector.shape_cast %106 : vector<8xf32> to vector<8x1xf32>
    %108 = vector.broadcast %107 : vector<8x1xf32> to vector<8x8xf32>
    %109 = arith.subf %105, %108 : vector<8x8xf32>
    %110 = math.exp %109 : vector<8x8xf32>
    %cst_34 = arith.constant dense<0.000000e+00> : vector<8xf32>
    %111 = vector.multi_reduction <add>, %110, %cst_34 [1] : vector<8x8xf32> to vector<8xf32>
    %112 = vector.shape_cast %111 : vector<8xf32> to vector<8x1xf32>
    %113 = tpu.reciprocal %112 {approx = true} : vector<8x1xf32> -> vector<8x1xf32>
    %114 = vector.broadcast %113 : vector<8x1xf32> to vector<8x8xf32>
    %115 = arith.mulf %110, %114 : vector<8x8xf32>
    %116 = arith.truncf %115 : vector<8x8xf32> to vector<8x8xbf16>
    %cst_35 = arith.constant dense<0.000000e+00> : vector<8x8xf32>
    %117 = tpu.matmul %116, %99, %cst_35 {dimension_numbers = #tpu.dot_dimension_numbers<[1], [0], [0], [1], [0, 0, 1, 1], [], []>} : vector<8x8xbf16>, vector<8x8xbf16>, vector<8x8xf32> -> vector<8x8xf32>
    %118 = arith.truncf %117 : vector<8x8xf32> to vector<8x8xbf16>
    %119 = vector.extract_strided_slice %4 {offsets = [2, 0, 0], sizes = [1, 8, 32], strides = [1, 1, 1]} : vector<4x8x32xf32> to vector<1x8x32xf32>
    %120 = vector.shape_cast %119 : vector<1x8x32xf32> to vector<8x32xf32>
    %121 = arith.truncf %120 : vector<8x32xf32> to vector<8x32xbf16>
    %cst_36 = arith.constant dense<0.000000e+00> : vector<8x32xf32>
    %122 = tpu.matmul %118, %121, %cst_36 {dimension_numbers = #tpu.dot_dimension_numbers<[1], [0], [0], [1], [0, 0, 1, 1], [], []>} : vector<8x8xbf16>, vector<8x32xbf16>, vector<8x32xf32> -> vector<8x32xf32>
    %123 = arith.addf %93, %122 : vector<8x32xf32>
    %124 = vector.extract_strided_slice %14 {offsets = [0, 24], sizes = [8, 8], strides = [1, 1]} : vector<8x32xf32> to vector<8x8xf32>
    %125 = arith.truncf %124 : vector<8x8xf32> to vector<8x8xbf16>
    %126 = vector.extract_strided_slice %22 {offsets = [0, 24], sizes = [8, 8], strides = [1, 1]} : vector<8x32xf32> to vector<8x8xf32>
    %127 = arith.truncf %126 : vector<8x8xf32> to vector<8x8xbf16>
    %128 = vector.extract_strided_slice %30 {offsets = [0, 24], sizes = [8, 8], strides = [1, 1]} : vector<8x32xf32> to vector<8x8xf32>
    %129 = arith.truncf %128 : vector<8x8xf32> to vector<8x8xbf16>
    "tpu.trace_start"() <{level = 10 : i32, message = "qe,ke->qk"}> : () -> ()
    %cst_37 = arith.constant dense<0.000000e+00> : vector<8x8xf32>
    %130 = tpu.matmul %125, %127, %cst_37 {dimension_numbers = #tpu.dot_dimension_numbers<[1], [1], [0], [0], [0, 0, 1, 0], [], []>} : vector<8x8xbf16>, vector<8x8xbf16>, vector<8x8xf32> -> vector<8x8xf32>
    "tpu.trace_stop"() : () -> ()
    %cst_38 = arith.constant 0.353553385 : f32
    %131 = vector.broadcast %cst_38 : f32 to vector<8x8xf32>
    %132 = arith.mulf %130, %131 : vector<8x8xf32>
    %133 = arith.cmpi sgt, %32, %31 : vector<8x8xi32>
    %cst_39 = arith.constant -1.000000e+30 : f32
    %134 = vector.broadcast %cst_39 : f32 to vector<8x8xf32>
    %135 = arith.select %133, %134, %132 : vector<8x8xi1>, vector<8x8xf32>
    %cst_40 = arith.constant dense<0xFF800000> : vector<8xf32>
    %136 = vector.multi_reduction <maximumf>, %135, %cst_40 [1] : vector<8x8xf32> to vector<8xf32>
    %137 = vector.shape_cast %136 : vector<8xf32> to vector<8x1xf32>
    %138 = vector.broadcast %137 : vector<8x1xf32> to vector<8x8xf32>
    %139 = arith.subf %135, %138 : vector<8x8xf32>
    %140 = math.exp %139 : vector<8x8xf32>
    %cst_41 = arith.constant dense<0.000000e+00> : vector<8xf32>
    %141 = vector.multi_reduction <add>, %140, %cst_41 [1] : vector<8x8xf32> to vector<8xf32>
    %142 = vector.shape_cast %141 : vector<8xf32> to vector<8x1xf32>
    %143 = tpu.reciprocal %142 {approx = true} : vector<8x1xf32> -> vector<8x1xf32>
    %144 = vector.broadcast %143 : vector<8x1xf32> to vector<8x8xf32>
    %145 = arith.mulf %140, %144 : vector<8x8xf32>
    %146 = arith.truncf %145 : vector<8x8xf32> to vector<8x8xbf16>
    %cst_42 = arith.constant dense<0.000000e+00> : vector<8x8xf32>
    %147 = tpu.matmul %146, %129, %cst_42 {dimension_numbers = #tpu.dot_dimension_numbers<[1], [0], [0], [1], [0, 0, 1, 1], [], []>} : vector<8x8xbf16>, vector<8x8xbf16>, vector<8x8xf32> -> vector<8x8xf32>
    %148 = arith.truncf %147 : vector<8x8xf32> to vector<8x8xbf16>
    %149 = vector.extract_strided_slice %4 {offsets = [3, 0, 0], sizes = [1, 8, 32], strides = [1, 1, 1]} : vector<4x8x32xf32> to vector<1x8x32xf32>
    %150 = vector.shape_cast %149 : vector<1x8x32xf32> to vector<8x32xf32>
    %151 = arith.truncf %150 : vector<8x32xf32> to vector<8x32xbf16>
    %cst_43 = arith.constant dense<0.000000e+00> : vector<8x32xf32>
    %152 = tpu.matmul %148, %151, %cst_43 {dimension_numbers = #tpu.dot_dimension_numbers<[1], [0], [0], [1], [0, 0, 1, 1], [], []>} : vector<8x8xbf16>, vector<8x32xbf16>, vector<8x32xf32> -> vector<8x32xf32>
    %153 = arith.addf %123, %152 : vector<8x32xf32>
    %154 = vector.broadcast %5 : vector<1x32xf32> to vector<8x32xf32>
    %155 = arith.addf %153, %154 : vector<8x32xf32>
    %156 = arith.addf %1, %155 : vector<8x32xf32>
    %c0_44 = arith.constant 0 : index
    %c0_45 = arith.constant 0 : index
    %157 = vector.load %arg6[%c0_44, %c0_45] : memref<1x32xf32, #tpu.memory_space<vmem>>, vector<1x32xf32>
    %c0_46 = arith.constant 0 : index
    %c0_47 = arith.constant 0 : index
    %158 = vector.load %arg7[%c0_46, %c0_47] : memref<1x32xf32, #tpu.memory_space<vmem>>, vector<1x32xf32>
    %cst_48 = arith.constant dense<0.000000e+00> : vector<8xf32>
    %159 = vector.multi_reduction <add>, %156, %cst_48 [1] : vector<8x32xf32> to vector<8xf32>
    %160 = vector.shape_cast %159 : vector<8xf32> to vector<8x1xf32>
    %cst_49 = arith.constant 3.200000e+01 : f32
    %161 = vector.broadcast %cst_49 : f32 to vector<8x1xf32>
    %162 = arith.divf %160, %161 : vector<8x1xf32>
    %163 = vector.broadcast %162 : vector<8x1xf32> to vector<8x32xf32>
    %164 = arith.subf %156, %163 : vector<8x32xf32>
    %165 = arith.mulf %164, %164 : vector<8x32xf32>
    %cst_50 = arith.constant dense<0.000000e+00> : vector<8xf32>
    %166 = vector.multi_reduction <add>, %165, %cst_50 [1] : vector<8x32xf32> to vector<8xf32>
    %167 = vector.shape_cast %166 : vector<8xf32> to vector<8x1xf32>
    %cst_51 = arith.constant 3.200000e+01 : f32
    %168 = vector.broadcast %cst_51 : f32 to vector<8x1xf32>
    %169 = arith.divf %167, %168 : vector<8x1xf32>
    %170 = vector.broadcast %162 : vector<8x1xf32> to vector<8x32xf32>
    %171 = arith.subf %156, %170 : vector<8x32xf32>
    %cst_52 = arith.constant 9.99999974E-6 : f32
    %172 = vector.broadcast %cst_52 : f32 to vector<8x1xf32>
    %173 = arith.addf %169, %172 : vector<8x1xf32>
    %174 = math.rsqrt %173 : vector<8x1xf32>
    %175 = vector.broadcast %174 : vector<8x1xf32> to vector<8x32xf32>
    %176 = arith.mulf %171, %175 : vector<8x32xf32>
    %177 = vector.broadcast %157 : vector<1x32xf32> to vector<8x32xf32>
    %178 = arith.mulf %176, %177 : vector<8x32xf32>
    %179 = vector.broadcast %158 : vector<1x32xf32> to vector<8x32xf32>
    %180 = arith.addf %178, %179 : vector<8x32xf32>
    %c0_53 = arith.constant 0 : index
    %c0_54 = arith.constant 0 : index
    %c0_55 = arith.constant 0 : index
    %181 = vector.load %arg8[%c0_53, %c0_54, %c0_55] : memref<1x8x32xf32, #tpu.memory_space<vmem>>, vector<1x8x32xf32>
    %182 = vector.shape_cast %181 : vector<1x8x32xf32> to vector<8x32xf32>
    %183 = vector.shape_cast %180 : vector<8x32xf32> to vector<1x8x32xf32>
    tpu.vector_store %arg8[%c0_53, %c0_54, %c0_55], %183 {strides = array<i32>} : memref<1x8x32xf32, #tpu.memory_space<vmem>>, vector<1x8x32xf32>,
    return
  }
  func.func @transform_0(%arg0: i32) -> (i32, i32, i32) {
    %c0_i32 = arith.constant 0 : i32
    %c0_i32_0 = arith.constant 0 : i32
    %c0_i32_1 = arith.constant 0 : i32
    return %arg0, %c0_i32, %c0_i32_0 : i32, i32, i32
  }
  func.func @transform_1(%arg0: i32) -> (i32, i32, i32) {
    %c0_i32 = arith.constant 0 : i32
    %c0_i32_0 = arith.constant 0 : i32
    %c0_i32_1 = arith.constant 0 : i32
    %c0_i32_2 = arith.constant 0 : i32
    return %c0_i32, %c0_i32_0, %c0_i32_1 : i32, i32, i32
  }
  func.func @transform_2(%arg0: i32) -> (i32, i32, i32) {
    %c0_i32 = arith.constant 0 : i32
    %c0_i32_0 = arith.constant 0 : i32
    %c0_i32_1 = arith.constant 0 : i32
    %c0_i32_2 = arith.constant 0 : i32
    return %c0_i32, %c0_i32_0, %c0_i32_1 : i32, i32, i32
  }
  func.func @transform_3(%arg0: i32) -> (i32, i32, i32) {
    %c0_i32 = arith.constant 0 : i32
    %c0_i32_0 = arith.constant 0 : i32
    %c0_i32_1 = arith.constant 0 : i32
    %c0_i32_2 = arith.constant 0 : i32
    return %c0_i32, %c0_i32_0, %c0_i32_1 : i32, i32, i32
  }
  func.func @transform_4(%arg0: i32) -> (i32, i32) {
    %c0_i32 = arith.constant 0 : i32
    %c0_i32_0 = arith.constant 0 : i32
    %c0_i32_1 = arith.constant 0 : i32
    return %c0_i32, %c0_i32_0 : i32, i32
  }
  func.func @transform_5(%arg0: i32) -> (i32, i32) {
    %c0_i32 = arith.constant 0 : i32
    %c0_i32_0 = arith.constant 0 : i32
    %c0_i32_1 = arith.constant 0 : i32
    return %c0_i32, %c0_i32_0 : i32, i32
  }
  func.func @transform_6(%arg0: i32) -> (i32, i32) {
    %c0_i32 = arith.constant 0 : i32
    %c0_i32_0 = arith.constant 0 : i32
    %c0_i32_1 = arith.constant 0 : i32
    return %c0_i32, %c0_i32_0 : i32, i32
  }
  func.func @transform_7(%arg0: i32) -> (i32, i32, i32) {
    %c0_i32 = arith.constant 0 : i32
    %c0_i32_0 = arith.constant 0 : i32
    %c0_i32_1 = arith.constant 0 : i32
    return %arg0, %c0_i32, %c0_i32_0 : i32, i32, i32
  }
}

module attributes {stable_mosaic.version = 11 : i64} {
  func.func @_moae_expert_ln_kernel(%arg0: i32, %arg1: i32, %arg2: memref<1x8x32xf32, #tpu.memory_space<vmem>>, %arg3: memref<1x1x8x1xf32, #tpu.memory_space<vmem>>, %arg4: memref<1x3x32x32xf32, #tpu.memory_space<vmem>>, %arg5: memref<1x3x1x32xf32, #tpu.memory_space<vmem>>, %arg6: memref<1x2x16x32xf32, #tpu.memory_space<vmem>>, %arg7: memref<1x1x32xf32, #tpu.memory_space<vmem>>, %arg8: memref<1x32xf32, #tpu.memory_space<vmem>>, %arg9: memref<1x32xf32, #tpu.memory_space<vmem>>, %arg10: memref<1x8x32xf32, #tpu.memory_space<vmem>>, %arg11: memref<8x32xf32, #tpu.memory_space<vmem>>) attributes {dimension_semantics = [#tpu.dimension_semantics<parallel>, #tpu.dimension_semantics<arbitrary>], iteration_bounds = array<i64: 2, 4>, scalar_prefetch = 0 : i64, scratch_operands = 1 : i64, tpu.core_type = #tpu.core_type<tc>, window_params = [{transform_indices = @transform_0, window_bounds = array<i64: 1, 8, 32>}, {transform_indices = @transform_1, window_bounds = array<i64: 1, 1, 8, 1>}, {transform_indices = @transform_2, window_bounds = array<i64: 1, 3, 32, 32>}, {transform_indices = @transform_3, window_bounds = array<i64: 1, 3, 1, 32>}, {transform_indices = @transform_4, window_bounds = array<i64: 1, 2, 16, 32>}, {transform_indices = @transform_5, window_bounds = array<i64: 1, 1, 32>}, {pipeline_mode = #tpu.pipeline_mode<synchronous>, transform_indices = @transform_6, window_bounds = array<i64: 1, 32>}, {pipeline_mode = #tpu.pipeline_mode<synchronous>, transform_indices = @transform_7, window_bounds = array<i64: 1, 32>}, {transform_indices = @transform_8, window_bounds = array<i64: 1, 8, 32>}]} {
    %c0_i32 = arith.constant 0 : i32
    %0 = arith.cmpi eq, %arg1, %c0_i32 : i32
    %1 = arith.extui %0 : i1 to i32
    %c0_i32_0 = arith.constant 0 : i32
    %2 = arith.cmpi ne, %1, %c0_i32_0 : i32
    scf.if %2 {
      %cst_42 = arith.constant 0.000000e+00 : f32
      %105 = vector.broadcast %cst_42 : f32 to vector<8x32xf32>
      %c0_43 = arith.constant 0 : index
      %c0_44 = arith.constant 0 : index
      %106 = vector.load %arg11[%c0_43, %c0_44] : memref<8x32xf32, #tpu.memory_space<vmem>>, vector<8x32xf32>
      tpu.vector_store %arg11[%c0_43, %c0_44], %105 {strides = array<i32>} : memref<8x32xf32, #tpu.memory_space<vmem>>, vector<8x32xf32>,
    } else {
    }
    %c0 = arith.constant 0 : index
    %c0_1 = arith.constant 0 : index
    %c0_2 = arith.constant 0 : index
    %3 = vector.load %arg2[%c0, %c0_1, %c0_2] : memref<1x8x32xf32, #tpu.memory_space<vmem>>, vector<1x8x32xf32>
    %4 = vector.shape_cast %3 : vector<1x8x32xf32> to vector<8x32xf32>
    %c0_3 = arith.constant 0 : index
    %c0_4 = arith.constant 0 : index
    %c0_5 = arith.constant 0 : index
    %c0_6 = arith.constant 0 : index
    %5 = vector.load %arg4[%c0_3, %c0_4, %c0_5, %c0_6] : memref<1x3x32x32xf32, #tpu.memory_space<vmem>>, vector<1x3x32x32xf32>
    %6 = vector.shape_cast %5 : vector<1x3x32x32xf32> to vector<3x32x32xf32>
    %c0_7 = arith.constant 0 : index
    %c0_8 = arith.constant 0 : index
    %c0_9 = arith.constant 0 : index
    %c0_10 = arith.constant 0 : index
    %7 = vector.load %arg5[%c0_7, %c0_8, %c0_9, %c0_10] : memref<1x3x1x32xf32, #tpu.memory_space<vmem>>, vector<1x3x1x32xf32>
    %8 = vector.shape_cast %7 : vector<1x3x1x32xf32> to vector<3x1x32xf32>
    %c0_11 = arith.constant 0 : index
    %c0_12 = arith.constant 0 : index
    %c0_13 = arith.constant 0 : index
    %c0_14 = arith.constant 0 : index
    %9 = vector.load %arg6[%c0_11, %c0_12, %c0_13, %c0_14] : memref<1x2x16x32xf32, #tpu.memory_space<vmem>>, vector<1x2x16x32xf32>
    %10 = vector.shape_cast %9 : vector<1x2x16x32xf32> to vector<2x16x32xf32>
    %c0_15 = arith.constant 0 : index
    %c0_16 = arith.constant 0 : index
    %c0_17 = arith.constant 0 : index
    %11 = vector.load %arg7[%c0_15, %c0_16, %c0_17] : memref<1x1x32xf32, #tpu.memory_space<vmem>>, vector<1x1x32xf32>
    %12 = vector.shape_cast %11 : vector<1x1x32xf32> to vector<1x32xf32>
    %13 = arith.truncf %4 : vector<8x32xf32> to vector<8x32xbf16>
    %14 = vector.extract_strided_slice %6 {offsets = [0, 0, 0], sizes = [1, 32, 32], strides = [1, 1, 1]} : vector<3x32x32xf32> to vector<1x32x32xf32>
    %15 = vector.shape_cast %14 : vector<1x32x32xf32> to vector<32x32xf32>
    %16 = arith.truncf %15 : vector<32x32xf32> to vector<32x32xbf16>
    %cst = arith.constant dense<0.000000e+00> : vector<8x32xf32>
    %17 = tpu.matmul %13, %16, %cst {dimension_numbers = #tpu.dot_dimension_numbers<[1], [0], [0], [1], [0, 0, 1, 1], [], []>} : vector<8x32xbf16>, vector<32x32xbf16>, vector<8x32xf32> -> vector<8x32xf32>
    %18 = vector.extract_strided_slice %8 {offsets = [0, 0, 0], sizes = [1, 1, 32], strides = [1, 1, 1]} : vector<3x1x32xf32> to vector<1x1x32xf32>
    %19 = vector.shape_cast %18 : vector<1x1x32xf32> to vector<1x32xf32>
    %20 = vector.broadcast %19 : vector<1x32xf32> to vector<8x32xf32>
    %21 = arith.addf %17, %20 : vector<8x32xf32>
    %22 = vector.extract_strided_slice %6 {offsets = [1, 0, 0], sizes = [1, 32, 32], strides = [1, 1, 1]} : vector<3x32x32xf32> to vector<1x32x32xf32>
    %23 = vector.shape_cast %22 : vector<1x32x32xf32> to vector<32x32xf32>
    %24 = arith.truncf %23 : vector<32x32xf32> to vector<32x32xbf16>
    %cst_18 = arith.constant dense<0.000000e+00> : vector<8x32xf32>
    %25 = tpu.matmul %13, %24, %cst_18 {dimension_numbers = #tpu.dot_dimension_numbers<[1], [0], [0], [1], [0, 0, 1, 1], [], []>} : vector<8x32xbf16>, vector<32x32xbf16>, vector<8x32xf32> -> vector<8x32xf32>
    %26 = vector.extract_strided_slice %8 {offsets = [1, 0, 0], sizes = [1, 1, 32], strides = [1, 1, 1]} : vector<3x1x32xf32> to vector<1x1x32xf32>
    %27 = vector.shape_cast %26 : vector<1x1x32xf32> to vector<1x32xf32>
    %28 = vector.broadcast %27 : vector<1x32xf32> to vector<8x32xf32>
    %29 = arith.addf %25, %28 : vector<8x32xf32>
    %30 = vector.extract_strided_slice %6 {offsets = [2, 0, 0], sizes = [1, 32, 32], strides = [1, 1, 1]} : vector<3x32x32xf32> to vector<1x32x32xf32>
    %31 = vector.shape_cast %30 : vector<1x32x32xf32> to vector<32x32xf32>
    %32 = arith.truncf %31 : vector<32x32xf32> to vector<32x32xbf16>
    %cst_19 = arith.constant dense<0.000000e+00> : vector<8x32xf32>
    %33 = tpu.matmul %13, %32, %cst_19 {dimension_numbers = #tpu.dot_dimension_numbers<[1], [0], [0], [1], [0, 0, 1, 1], [], []>} : vector<8x32xbf16>, vector<32x32xbf16>, vector<8x32xf32> -> vector<8x32xf32>
    %34 = vector.extract_strided_slice %8 {offsets = [2, 0, 0], sizes = [1, 1, 32], strides = [1, 1, 1]} : vector<3x1x32xf32> to vector<1x1x32xf32>
    %35 = vector.shape_cast %34 : vector<1x1x32xf32> to vector<1x32xf32>
    %36 = vector.broadcast %35 : vector<1x32xf32> to vector<8x32xf32>
    %37 = arith.addf %33, %36 : vector<8x32xf32>
    %cst_20 = arith.constant 0.000000e+00 : f32
    %38 = vector.broadcast %cst_20 : f32 to vector<8x32xf32>
    %39 = vector.extract_strided_slice %21 {offsets = [0, 0], sizes = [8, 16], strides = [1, 1]} : vector<8x32xf32> to vector<8x16xf32>
    %40 = arith.truncf %39 : vector<8x16xf32> to vector<8x16xbf16>
    %41 = vector.extract_strided_slice %29 {offsets = [0, 0], sizes = [8, 16], strides = [1, 1]} : vector<8x32xf32> to vector<8x16xf32>
    %42 = arith.truncf %41 : vector<8x16xf32> to vector<8x16xbf16>
    %43 = vector.extract_strided_slice %37 {offsets = [0, 0], sizes = [8, 16], strides = [1, 1]} : vector<8x32xf32> to vector<8x16xf32>
    %44 = arith.truncf %43 : vector<8x16xf32> to vector<8x16xbf16>
    "tpu.trace_start"() <{level = 10 : i32, message = "qe,ke->qk"}> : () -> ()
    %cst_21 = arith.constant dense<0.000000e+00> : vector<8x8xf32>
    %45 = tpu.matmul %40, %42, %cst_21 {dimension_numbers = #tpu.dot_dimension_numbers<[1], [1], [0], [0], [0, 0, 1, 0], [], []>} : vector<8x16xbf16>, vector<8x16xbf16>, vector<8x8xf32> -> vector<8x8xf32>
    "tpu.trace_stop"() : () -> ()
    %cst_22 = arith.constant 2.500000e-01 : f32
    %46 = vector.broadcast %cst_22 : f32 to vector<8x8xf32>
    %47 = arith.mulf %45, %46 : vector<8x8xf32>
    %cst_23 = arith.constant dense<0xFF800000> : vector<8xf32>
    %48 = vector.multi_reduction <maximumf>, %47, %cst_23 [1] : vector<8x8xf32> to vector<8xf32>
    %49 = vector.shape_cast %48 : vector<8xf32> to vector<8x1xf32>
    %50 = vector.broadcast %49 : vector<8x1xf32> to vector<8x8xf32>
    %51 = arith.subf %47, %50 : vector<8x8xf32>
    %52 = math.exp %51 : vector<8x8xf32>
    %cst_24 = arith.constant dense<0.000000e+00> : vector<8xf32>
    %53 = vector.multi_reduction <add>, %52, %cst_24 [1] : vector<8x8xf32> to vector<8xf32>
    %54 = vector.shape_cast %53 : vector<8xf32> to vector<8x1xf32>
    %55 = tpu.reciprocal %54 {approx = true} : vector<8x1xf32> -> vector<8x1xf32>
    %56 = vector.broadcast %55 : vector<8x1xf32> to vector<8x8xf32>
    %57 = arith.mulf %52, %56 : vector<8x8xf32>
    %58 = arith.truncf %57 : vector<8x8xf32> to vector<8x8xbf16>
    %cst_25 = arith.constant dense<0.000000e+00> : vector<8x16xf32>
    %59 = tpu.matmul %58, %44, %cst_25 {dimension_numbers = #tpu.dot_dimension_numbers<[1], [0], [0], [1], [0, 0, 1, 1], [], []>} : vector<8x8xbf16>, vector<8x16xbf16>, vector<8x16xf32> -> vector<8x16xf32>
    %60 = arith.truncf %59 : vector<8x16xf32> to vector<8x16xbf16>
    %61 = vector.extract_strided_slice %10 {offsets = [0, 0, 0], sizes = [1, 16, 32], strides = [1, 1, 1]} : vector<2x16x32xf32> to vector<1x16x32xf32>
    %62 = vector.shape_cast %61 : vector<1x16x32xf32> to vector<16x32xf32>
    %63 = arith.truncf %62 : vector<16x32xf32> to vector<16x32xbf16>
    %cst_26 = arith.constant dense<0.000000e+00> : vector<8x32xf32>
    %64 = tpu.matmul %60, %63, %cst_26 {dimension_numbers = #tpu.dot_dimension_numbers<[1], [0], [0], [1], [0, 0, 1, 1], [], []>} : vector<8x16xbf16>, vector<16x32xbf16>, vector<8x32xf32> -> vector<8x32xf32>
    %65 = arith.addf %38, %64 : vector<8x32xf32>
    %66 = vector.extract_strided_slice %21 {offsets = [0, 16], sizes = [8, 16], strides = [1, 1]} : vector<8x32xf32> to vector<8x16xf32>
    %67 = arith.truncf %66 : vector<8x16xf32> to vector<8x16xbf16>
    %68 = vector.extract_strided_slice %29 {offsets = [0, 16], sizes = [8, 16], strides = [1, 1]} : vector<8x32xf32> to vector<8x16xf32>
    %69 = arith.truncf %68 : vector<8x16xf32> to vector<8x16xbf16>
    %70 = vector.extract_strided_slice %37 {offsets = [0, 16], sizes = [8, 16], strides = [1, 1]} : vector<8x32xf32> to vector<8x16xf32>
    %71 = arith.truncf %70 : vector<8x16xf32> to vector<8x16xbf16>
    "tpu.trace_start"() <{level = 10 : i32, message = "qe,ke->qk"}> : () -> ()
    %cst_27 = arith.constant dense<0.000000e+00> : vector<8x8xf32>
    %72 = tpu.matmul %67, %69, %cst_27 {dimension_numbers = #tpu.dot_dimension_numbers<[1], [1], [0], [0], [0, 0, 1, 0], [], []>} : vector<8x16xbf16>, vector<8x16xbf16>, vector<8x8xf32> -> vector<8x8xf32>
    "tpu.trace_stop"() : () -> ()
    %cst_28 = arith.constant 2.500000e-01 : f32
    %73 = vector.broadcast %cst_28 : f32 to vector<8x8xf32>
    %74 = arith.mulf %72, %73 : vector<8x8xf32>
    %cst_29 = arith.constant dense<0xFF800000> : vector<8xf32>
    %75 = vector.multi_reduction <maximumf>, %74, %cst_29 [1] : vector<8x8xf32> to vector<8xf32>
    %76 = vector.shape_cast %75 : vector<8xf32> to vector<8x1xf32>
    %77 = vector.broadcast %76 : vector<8x1xf32> to vector<8x8xf32>
    %78 = arith.subf %74, %77 : vector<8x8xf32>
    %79 = math.exp %78 : vector<8x8xf32>
    %cst_30 = arith.constant dense<0.000000e+00> : vector<8xf32>
    %80 = vector.multi_reduction <add>, %79, %cst_30 [1] : vector<8x8xf32> to vector<8xf32>
    %81 = vector.shape_cast %80 : vector<8xf32> to vector<8x1xf32>
    %82 = tpu.reciprocal %81 {approx = true} : vector<8x1xf32> -> vector<8x1xf32>
    %83 = vector.broadcast %82 : vector<8x1xf32> to vector<8x8xf32>
    %84 = arith.mulf %79, %83 : vector<8x8xf32>
    %85 = arith.truncf %84 : vector<8x8xf32> to vector<8x8xbf16>
    %cst_31 = arith.constant dense<0.000000e+00> : vector<8x16xf32>
    %86 = tpu.matmul %85, %71, %cst_31 {dimension_numbers = #tpu.dot_dimension_numbers<[1], [0], [0], [1], [0, 0, 1, 1], [], []>} : vector<8x8xbf16>, vector<8x16xbf16>, vector<8x16xf32> -> vector<8x16xf32>
    %87 = arith.truncf %86 : vector<8x16xf32> to vector<8x16xbf16>
    %88 = vector.extract_strided_slice %10 {offsets = [1, 0, 0], sizes = [1, 16, 32], strides = [1, 1, 1]} : vector<2x16x32xf32> to vector<1x16x32xf32>
    %89 = vector.shape_cast %88 : vector<1x16x32xf32> to vector<16x32xf32>
    %90 = arith.truncf %89 : vector<16x32xf32> to vector<16x32xbf16>
    %cst_32 = arith.constant dense<0.000000e+00> : vector<8x32xf32>
    %91 = tpu.matmul %87, %90, %cst_32 {dimension_numbers = #tpu.dot_dimension_numbers<[1], [0], [0], [1], [0, 0, 1, 1], [], []>} : vector<8x16xbf16>, vector<16x32xbf16>, vector<8x32xf32> -> vector<8x32xf32>
    %92 = arith.addf %65, %91 : vector<8x32xf32>
    %93 = vector.broadcast %12 : vector<1x32xf32> to vector<8x32xf32>
    %94 = arith.addf %92, %93 : vector<8x32xf32>
    %c0_33 = arith.constant 0 : index
    %c0_34 = arith.constant 0 : index
    %c0_35 = arith.constant 0 : index
    %c0_36 = arith.constant 0 : index
    %95 = vector.load %arg3[%c0_33, %c0_34, %c0_35, %c0_36] : memref<1x1x8x1xf32, #tpu.memory_space<vmem>>, vector<1x1x8x1xf32>
    %96 = vector.shape_cast %95 : vector<1x1x8x1xf32> to vector<8x1xf32>
    %c0_37 = arith.constant 0 : index
    %c0_38 = arith.constant 0 : index
    %97 = vector.load %arg11[%c0_37, %c0_38] : memref<8x32xf32, #tpu.memory_space<vmem>>, vector<8x32xf32>
    %98 = vector.broadcast %96 : vector<8x1xf32> to vector<8x32xf32>
    %99 = arith.mulf %98, %94 : vector<8x32xf32>
    %100 = arith.addf %97, %99 : vector<8x32xf32>
    %c0_39 = arith.constant 0 : index
    %c0_40 = arith.constant 0 : index
    %101 = vector.load %arg11[%c0_39, %c0_40] : memref<8x32xf32, #tpu.memory_space<vmem>>, vector<8x32xf32>
    tpu.vector_store %arg11[%c0_39, %c0_40], %100 {strides = array<i32>} : memref<8x32xf32, #tpu.memory_space<vmem>>, vector<8x32xf32>,
    %c3_i32 = arith.constant 3 : i32
    %102 = arith.cmpi eq, %arg1, %c3_i32 : i32
    %103 = arith.extui %102 : i1 to i32
    %c0_i32_41 = arith.constant 0 : i32
    %104 = arith.cmpi ne, %103, %c0_i32_41 : i32
    scf.if %104 {
      %c0_42 = arith.constant 0 : index
      %c0_43 = arith.constant 0 : index
      %105 = vector.load %arg11[%c0_42, %c0_43] : memref<8x32xf32, #tpu.memory_space<vmem>>, vector<8x32xf32>
      %106 = arith.addf %4, %105 : vector<8x32xf32>
      %c0_44 = arith.constant 0 : index
      %c0_45 = arith.constant 0 : index
      %107 = vector.load %arg8[%c0_44, %c0_45] : memref<1x32xf32, #tpu.memory_space<vmem>>, vector<1x32xf32>
      %c0_46 = arith.constant 0 : index
      %c0_47 = arith.constant 0 : index
      %108 = vector.load %arg9[%c0_46, %c0_47] : memref<1x32xf32, #tpu.memory_space<vmem>>, vector<1x32xf32>
      %cst_48 = arith.constant dense<0.000000e+00> : vector<8xf32>
      %109 = vector.multi_reduction <add>, %106, %cst_48 [1] : vector<8x32xf32> to vector<8xf32>
      %110 = vector.shape_cast %109 : vector<8xf32> to vector<8x1xf32>
      %cst_49 = arith.constant 3.200000e+01 : f32
      %111 = vector.broadcast %cst_49 : f32 to vector<8x1xf32>
      %112 = arith.divf %110, %111 : vector<8x1xf32>
      %113 = vector.broadcast %112 : vector<8x1xf32> to vector<8x32xf32>
      %114 = arith.subf %106, %113 : vector<8x32xf32>
      %115 = arith.mulf %114, %114 : vector<8x32xf32>
      %cst_50 = arith.constant dense<0.000000e+00> : vector<8xf32>
      %116 = vector.multi_reduction <add>, %115, %cst_50 [1] : vector<8x32xf32> to vector<8xf32>
      %117 = vector.shape_cast %116 : vector<8xf32> to vector<8x1xf32>
      %cst_51 = arith.constant 3.200000e+01 : f32
      %118 = vector.broadcast %cst_51 : f32 to vector<8x1xf32>
      %119 = arith.divf %117, %118 : vector<8x1xf32>
      %120 = vector.broadcast %112 : vector<8x1xf32> to vector<8x32xf32>
      %121 = arith.subf %106, %120 : vector<8x32xf32>
      %cst_52 = arith.constant 9.99999974E-6 : f32
      %122 = vector.broadcast %cst_52 : f32 to vector<8x1xf32>
      %123 = arith.addf %119, %122 : vector<8x1xf32>
      %124 = math.rsqrt %123 : vector<8x1xf32>
      %125 = vector.broadcast %124 : vector<8x1xf32> to vector<8x32xf32>
      %126 = arith.mulf %121, %125 : vector<8x32xf32>
      %127 = vector.broadcast %107 : vector<1x32xf32> to vector<8x32xf32>
      %128 = arith.mulf %126, %127 : vector<8x32xf32>
      %129 = vector.broadcast %108 : vector<1x32xf32> to vector<8x32xf32>
      %130 = arith.addf %128, %129 : vector<8x32xf32>
      %c0_53 = arith.constant 0 : index
      %c0_54 = arith.constant 0 : index
      %c0_55 = arith.constant 0 : index
      %131 = vector.load %arg10[%c0_53, %c0_54, %c0_55] : memref<1x8x32xf32, #tpu.memory_space<vmem>>, vector<1x8x32xf32>
      %132 = vector.shape_cast %131 : vector<1x8x32xf32> to vector<8x32xf32>
      %133 = vector.shape_cast %130 : vector<8x32xf32> to vector<1x8x32xf32>
      tpu.vector_store %arg10[%c0_53, %c0_54, %c0_55], %133 {strides = array<i32>} : memref<1x8x32xf32, #tpu.memory_space<vmem>>, vector<1x8x32xf32>,
    } else {
    }
    return
  }
  func.func @transform_0(%arg0: i32, %arg1: i32) -> (i32, i32, i32) {
    %c0_i32 = arith.constant 0 : i32
    %c0_i32_0 = arith.constant 0 : i32
    %c0_i32_1 = arith.constant 0 : i32
    return %arg0, %c0_i32, %c0_i32_0 : i32, i32, i32
  }
  func.func @transform_1(%arg0: i32, %arg1: i32) -> (i32, i32, i32, i32) {
    %c0_i32 = arith.constant 0 : i32
    %c0_i32_0 = arith.constant 0 : i32
    %c0_i32_1 = arith.constant 0 : i32
    return %arg1, %arg0, %c0_i32, %c0_i32_0 : i32, i32, i32, i32
  }
  func.func @transform_2(%arg0: i32, %arg1: i32) -> (i32, i32, i32, i32) {
    %c0_i32 = arith.constant 0 : i32
    %c0_i32_0 = arith.constant 0 : i32
    %c0_i32_1 = arith.constant 0 : i32
    %c0_i32_2 = arith.constant 0 : i32
    return %arg1, %c0_i32, %c0_i32_0, %c0_i32_1 : i32, i32, i32, i32
  }
  func.func @transform_3(%arg0: i32, %arg1: i32) -> (i32, i32, i32, i32) {
    %c0_i32 = arith.constant 0 : i32
    %c0_i32_0 = arith.constant 0 : i32
    %c0_i32_1 = arith.constant 0 : i32
    %c0_i32_2 = arith.constant 0 : i32
    return %arg1, %c0_i32, %c0_i32_0, %c0_i32_1 : i32, i32, i32, i32
  }
  func.func @transform_4(%arg0: i32, %arg1: i32) -> (i32, i32, i32, i32) {
    %c0_i32 = arith.constant 0 : i32
    %c0_i32_0 = arith.constant 0 : i32
    %c0_i32_1 = arith.constant 0 : i32
    %c0_i32_2 = arith.constant 0 : i32
    return %arg1, %c0_i32, %c0_i32_0, %c0_i32_1 : i32, i32, i32, i32
  }
  func.func @transform_5(%arg0: i32, %arg1: i32) -> (i32, i32, i32) {
    %c0_i32 = arith.constant 0 : i32
    %c0_i32_0 = arith.constant 0 : i32
    %c0_i32_1 = arith.constant 0 : i32
    return %arg1, %c0_i32, %c0_i32_0 : i32, i32, i32
  }
  func.func @transform_6(%arg0: i32, %arg1: i32) -> (i32, i32) {
    %c0_i32 = arith.constant 0 : i32
    %c0_i32_0 = arith.constant 0 : i32
    %c0_i32_1 = arith.constant 0 : i32
    return %c0_i32, %c0_i32_0 : i32, i32
  }
  func.func @transform_7(%arg0: i32, %arg1: i32) -> (i32, i32) {
    %c0_i32 = arith.constant 0 : i32
    %c0_i32_0 = arith.constant 0 : i32
    %c0_i32_1 = arith.constant 0 : i32
    return %c0_i32, %c0_i32_0 : i32, i32
  }
  func.func @transform_8(%arg0: i32, %arg1: i32) -> (i32, i32, i32) {
    %c0_i32 = arith.constant 0 : i32
    %c0_i32_0 = arith.constant 0 : i32
    %c0_i32_1 = arith.constant 0 : i32
    return %arg0, %c0_i32, %c0_i32_0 : i32, i32, i32
  }
}

module attributes {stable_mosaic.version = 11 : i64} {
  func.func @_matmul_kernel(%arg0: i32, %arg1: i32, %arg2: i32, %arg3: memref<16x32xf32, #tpu.memory_space<vmem>>, %arg4: memref<32x64xf32, #tpu.memory_space<vmem>>, %arg5: memref<1x64xf32, #tpu.memory_space<vmem>>, %arg6: memref<16x64xf32, #tpu.memory_space<vmem>>, %arg7: memref<16x64xf32, #tpu.memory_space<vmem>>) attributes {dimension_semantics = [#tpu.dimension_semantics<parallel>, #tpu.dimension_semantics<parallel>, #tpu.dimension_semantics<arbitrary>], iteration_bounds = array<i64: 1, 1, 1>, scalar_prefetch = 0 : i64, scratch_operands = 1 : i64, tpu.core_type = #tpu.core_type<tc>, window_params = [{transform_indices = @transform_0, window_bounds = array<i64: 16, 32>}, {transform_indices = @transform_1, window_bounds = array<i64: 32, 64>}, {transform_indices = @transform_2, window_bounds = array<i64: 1, 64>}, {transform_indices = @transform_3, window_bounds = array<i64: 16, 64>}]} {
    %c0_i32 = arith.constant 0 : i32
    %0 = arith.cmpi eq, %arg2, %c0_i32 : i32
    %1 = arith.extui %0 : i1 to i32
    %c0_i32_0 = arith.constant 0 : i32
    %2 = arith.cmpi ne, %1, %c0_i32_0 : i32
    scf.if %2 {
      %cst_10 = arith.constant 0.000000e+00 : f32
      %14 = vector.broadcast %cst_10 : f32 to vector<16x64xf32>
      %c0_11 = arith.constant 0 : index
      %c0_12 = arith.constant 0 : index
      %15 = vector.load %arg7[%c0_11, %c0_12] : memref<16x64xf32, #tpu.memory_space<vmem>>, vector<16x64xf32>
      tpu.vector_store %arg7[%c0_11, %c0_12], %14 {strides = array<i32>} : memref<16x64xf32, #tpu.memory_space<vmem>>, vector<16x64xf32>,
    } else {
    }
    %c0 = arith.constant 0 : index
    %c0_1 = arith.constant 0 : index
    %3 = vector.load %arg7[%c0, %c0_1] : memref<16x64xf32, #tpu.memory_space<vmem>>, vector<16x64xf32>
    %c0_2 = arith.constant 0 : index
    %c0_3 = arith.constant 0 : index
    %4 = vector.load %arg3[%c0_2, %c0_3] : memref<16x32xf32, #tpu.memory_space<vmem>>, vector<16x32xf32>
    %5 = arith.truncf %4 : vector<16x32xf32> to vector<16x32xbf16>
    %c0_4 = arith.constant 0 : index
    %c0_5 = arith.constant 0 : index
    %6 = vector.load %arg4[%c0_4, %c0_5] : memref<32x64xf32, #tpu.memory_space<vmem>>, vector<32x64xf32>
    %7 = arith.truncf %6 : vector<32x64xf32> to vector<32x64xbf16>
    %cst = arith.constant dense<0.000000e+00> : vector<16x64xf32>
    %8 = tpu.matmul %5, %7, %cst {dimension_numbers = #tpu.dot_dimension_numbers<[1], [0], [0], [1], [0, 0, 1, 1], [], []>} : vector<16x32xbf16>, vector<32x64xbf16>, vector<16x64xf32> -> vector<16x64xf32>
    %9 = arith.addf %3, %8 : vector<16x64xf32>
    %c0_6 = arith.constant 0 : index
    %c0_7 = arith.constant 0 : index
    %10 = vector.load %arg7[%c0_6, %c0_7] : memref<16x64xf32, #tpu.memory_space<vmem>>, vector<16x64xf32>
    tpu.vector_store %arg7[%c0_6, %c0_7], %9 {strides = array<i32>} : memref<16x64xf32, #tpu.memory_space<vmem>>, vector<16x64xf32>,
    %c0_i32_8 = arith.constant 0 : i32
    %11 = arith.cmpi eq, %arg2, %c0_i32_8 : i32
    %12 = arith.extui %11 : i1 to i32
    %c0_i32_9 = arith.constant 0 : i32
    %13 = arith.cmpi ne, %12, %c0_i32_9 : i32
    scf.if %13 {
      %c0_10 = arith.constant 0 : index
      %c0_11 = arith.constant 0 : index
      %14 = vector.load %arg7[%c0_10, %c0_11] : memref<16x64xf32, #tpu.memory_space<vmem>>, vector<16x64xf32>
      %c0_12 = arith.constant 0 : index
      %c0_13 = arith.constant 0 : index
      %15 = vector.load %arg5[%c0_12, %c0_13] : memref<1x64xf32, #tpu.memory_space<vmem>>, vector<1x64xf32>
      %16 = vector.broadcast %15 : vector<1x64xf32> to vector<16x64xf32>
      %17 = arith.addf %14, %16 : vector<16x64xf32>
      %c0_14 = arith.constant 0 : index
      %c0_15 = arith.constant 0 : index
      %18 = vector.load %arg6[%c0_14, %c0_15] : memref<16x64xf32, #tpu.memory_space<vmem>>, vector<16x64xf32>
      tpu.vector_store %arg6[%c0_14, %c0_15], %17 {strides = array<i32>} : memref<16x64xf32, #tpu.memory_space<vmem>>, vector<16x64xf32>,
    } else {
    }
    return
  }
  func.func @transform_0(%arg0: i32, %arg1: i32, %arg2: i32) -> (i32, i32) {
    %c0_i32 = arith.constant 0 : i32
    return %arg0, %arg2 : i32, i32
  }
  func.func @transform_1(%arg0: i32, %arg1: i32, %arg2: i32) -> (i32, i32) {
    %c0_i32 = arith.constant 0 : i32
    return %arg2, %arg1 : i32, i32
  }
  func.func @transform_2(%arg0: i32, %arg1: i32, %arg2: i32) -> (i32, i32) {
    %c0_i32 = arith.constant 0 : i32
    %c0_i32_0 = arith.constant 0 : i32
    return %c0_i32, %arg1 : i32, i32
  }
  func.func @transform_3(%arg0: i32, %arg1: i32, %arg2: i32) -> (i32, i32) {
    %c0_i32 = arith.constant 0 : i32
    return %arg0, %arg1 : i32, i32
  }
}

</mosaic_0001>

<bundles_post_ra>
// kernel: _lambda_.8
= control target key start
LH: loop header
LB: loop body
LE: loop exit
PB: predicated region body
PF: predicated region fallthrough
CT: control target
= control target key end

     0   :  { %vm19_vm0 = vcmask 31744   ;;  %v76_v3 = vmov 0.0   ;;  %vm33_vm1 = vcmask 261120   ;;  %s130_s1 = inlined_call_operand.vmem [shape: f32[32,4], index: 1, kind: input, shape index: {}]   ;;  %s131_s0 = inlined_call_operand.vmem [shape: f32[16,32], index: 0, kind: input, shape index: {}]   ;;  %s132_s2 = inlined_call_operand.vmem [shape: f32[1,4], index: 2, kind: input, shape index: {}]   ;;  %s133_s3 = inlined_call_operand.vmem [shape: f32[16,4], index: 3, kind: output, shape index: {}]  }
   0x1   :  { %v29_v0 = vld [vmem:[%s130_s1 + $0x10] sm:$0xff]  ;;  %v30_v1 = vld [vmem:[%s130_s1 + $0x18] sm:$0xff]  ;;  %v27_v2 = vld [vmem:[%s130_s1] sm:$0xff]  ;;  %20 = vst.msk [vmem:[#allocation2] sm:$0xff] %vm19_vm0, %v76_v3 }
   0x2   :  { %v32_v4 = vpack.c.bf16 %v30_v1, %v29_v0  ;;  %v28_v5 = vld [vmem:[%s130_s1 + $0x8] sm:$0xff]  ;;  %21 = vst.msk [vmem:[#allocation2 + $0x8] sm:$0xff] %vm19_vm0, %v76_v3  ;;  %v24_v7 = vld [vmem:[%s131_s0] sm:$0xff] }
   0x3   :  { %v31_v6 = vpack.c.bf16 %v28_v5, %v27_v2  ;;  %v25_v8 = vld [vmem:[%s131_s0 + $0x8] sm:$0xff]  ;;  %v75_v14 = vld [vmem:[%s132_s2] ss:$0 sm:$0xff] }
   0x4   :  { %43 = vmatpush.bf16.msra.mxu0 %v32_v4  ;;  %v26_v9 = vpack.c.bf16 %v25_v8, %v24_v7 }
   0x8   :  { %44 = vmatpush.bf16.msra.mxu0 %v31_v6  ;;  %v22_v10 = vld [vmem:[#allocation2] sm:$0xff] }
   0x9   :  { %v23_v13 = vld [vmem:[#allocation2 + $0x8] sm:$0xff] }
   0xb   :  { %73 = vmatmul.msk.bf16.vlgmr.msra.gmra.mxu0 %vm33_vm1, %v26_v9 }
  0x88   :  { %v46_v11 = vpop.f32.mrf.mxu0 }
  0x89   :  { %v51_v12 = vadd.f32 %v46_v11, %v22_v10 }
  0x8b   :  { %54 = vst.msk [vmem:[#allocation2] sm:$0xff] %vm19_vm0, %v51_v12 }
  0x90   :  { %v48_v15 = vpop.f32.mrf.mxu0 }
  0x91   :  { %v52_v16 = vadd.f32 %v48_v15, %v23_v13 }
  0x92   :  { %v59_v17 = vld [vmem:[#allocation2] sm:$0xff] }
  0x93   :  { %v65_v18 = vadd.f32 %v75_v14, %v59_v17  ;;  %55 = vst.msk [vmem:[#allocation2 + $0x8] sm:$0xff] %vm19_vm0, %v52_v16 }
  0x95   :  { %67 = vst.msk [vmem:[%s133_s3] sm:$0xff] %vm19_vm0, %v65_v18 }
  0x9a   :  { %v60_v19 = vld [vmem:[#allocation2 + $0x8] sm:$0xff] }
  0x9b   :  { %v66_v20 = vadd.f32 %v75_v14, %v60_v19 }
  0x9d   :  { %68 = vst.msk [vmem:[%s133_s3 + $0x8] sm:$0xff] %vm19_vm0, %v66_v20 }

// kernel: _lambda_.7
= control target key start
LH: loop header
LB: loop body
LE: loop exit
PB: predicated region body
PF: predicated region fallthrough
CT: control target
= control target key end

     0   :  { %s892_s24 = smov 0   ;;  %s1064_s0 = inlined_call_operand.vmem [shape: f32[2,8,32], index: 0, kind: input, shape index: {}]   ;;  %s1065_s1 = inlined_call_operand.vmem [shape: f32[3,32,32], index: 1, kind: input, shape index: {}]   ;;  %s1066_s2 = inlined_call_operand.vmem [shape: f32[3,1,32], index: 2, kind: input, shape index: {}]   ;;  %s1067_s3 = inlined_call_operand.vmem [shape: f32[4,8,32], index: 3, kind: input, shape index: {}]   ;;  %s1068_s4 = inlined_call_operand.vmem [shape: f32[1,32], index: 4, kind: input, shape index: {}]   ;;  %s1069_s5 = inlined_call_operand.vmem [shape: f32[1,32], index: 5, kind: input, shape index: {}]   ;;  %s1070_s6 = inlined_call_operand.vmem [shape: f32[1,32], index: 6, kind: input, shape index: {}]   ;;  %s1071_s7 = inlined_call_operand.vmem [shape: f32[2,8,32], index: 7, kind: output, shape index: {}]  }
   0x1 LB: > { %s778_s25 = sadd.s32 4294967295, %s846_s24   ;;  %p782_p0 = scmp.ge.s32.totalorder %s846_s24, 1  ;;  %s846_s24 = sphi %s892_s24, %s17_s24  }
   0x2   : > { %p236_p1 = scmp.lt.s32.totalorder %s846_s24, 3 }
   0x4   : > { %p237_p2 = pnand %p782_p0, %p236_p1 }
   0x5   : > { %p266_p3 = scmp.lt.s32.totalorder (!%p237_p2), %s778_s25, 1  ;;  %s848_s29 = smov (!%p237_p2), 112  }
   0x6   : > { %240 = sbr.rel (%p237_p2) target bundleno = 1629 (0x65d), region = 48  ;;  %s849_s30 = smov (!%p237_p2), 120  }
   0x7   : > { %s850_s8 = smov (!%p237_p2), 104  }
   0xb   : > { %v278_v0 = vld [vmem:[%s1065_s1 + $0x10] sm:$0xff]  ;;  %v279_v1 = vld [vmem:[%s1065_s1 + $0x18] sm:$0xff]  ;;  %v276_v5 = vld [vmem:[%s1065_s1] sm:$0xff]  ;;  %s1073_s25 = smov (!%p266_p3, %s778_s25), 1  ;;  %vm302_vm0 = vcmask 261120   ;;  %vm362_vm1 = vcmask 64512   ;;  %v355_v36 = vlaneseq }
   0xc   : > { %v282_v2 = vld [vmem:[%s1065_s1 + $0x30] sm:$0xff]  ;;  %v298_v3 = vpack.c.bf16 %v279_v1, %v278_v0  ;;  %v283_v4 = vld [vmem:[%s1065_s1 + $0x38] sm:$0xff]  ;;  %v277_v6 = vld [vmem:[%s1065_s1 + $0x8] sm:$0xff]  ;;  %s783_s19 = sshll.u32 %s1073_s25, 3  ;;  %vm400_vm3 = vcmask 1043456  }
   0xd   : > { %v320_v7 = vpack.c.bf16 %v283_v4, %v282_v2  ;;  %v280_v8 = vld [vmem:[%s1065_s1 + $0x20] sm:$0xff]  ;;  %v281_v9 = vld [vmem:[%s1065_s1 + $0x28] sm:$0xff]  ;;  %v297_v10 = vpack.c.bf16 %v277_v6, %v276_v5  ;;  %s269_s22 = scalar_lea.vmem %s1064_s0, %s783_s19  ;;  %v286_v29 = vld [vmem:[%s1065_s1 + $0x50] sm:$0xff]  ;;  %v972_v37 = vshrl.u32 %v355_v36, 7  ;;  %v974_v38 = vand.u32 127, %v355_v36  ;;  %s273_s15 = scalar_lea.vmem %s1071_s7, %s783_s19 }
   0xe   : > { %312 = vmatpush.bf16.msra.mxu0 %v298_v3  ;;  %v319_v11 = vpack.c.bf16 %v281_v9, %v280_v8  ;;  %v932_v12 = vld [vmem:[%s269_s22] sm:$0xff]  ;;  %v287_v30 = vld [vmem:[%s1065_s1 + $0x58] sm:$0xff]  ;;  %v285_v33 = vld [vmem:[%s1065_s1 + $0x48] sm:$0xff] }
   0xf   : > { %330 = vmatpush.bf16.msra.mxu1 %v320_v7  ;;  %v296_v13 = vpack.c.bf16 %v932_v12, %v932_v12  ;;  %v815_v14 = vld [vmem:[%s1066_s2 + $0x1] ss:$0 sm:$0xff]  ;;  %v814_v17 = vld [vmem:[%s1066_s2] ss:$0 sm:$0xff]  ;;  %v338_v32 = vpack.c.bf16 %v287_v30, %v286_v29  ;;  %vm383_vm2 = vcmp.gt.s32.totalorder %v974_v38, %v972_v37  ;;  %v816_v61 = vld [vmem:[%s1066_s2 + $0x2] ss:$0 sm:$0xff] }
  0x10   : > { %v284_v31 = vld [vmem:[%s1065_s1 + $0x40] sm:$0xff] }
  0x11   : > { %348 = vmatpush.bf16.msra.mxu2 %v338_v32  ;;  %v337_v34 = vpack.c.bf16 %v285_v33, %v284_v31  ;;  %v291_v5 = vld [vmem:[%s1067_s3] sm:$0xff] }
  0x12   : > { %313 = vmatpush.bf16.msra.mxu0 %v297_v10  ;;  %v418_v6 = vpack.c.bf16 %v291_v5, %v291_v5 }
  0x13   : > { %331 = vmatpush.bf16.msra.mxu1 %v319_v11 }
  0x14   : > { %v505_v8 = vsel %vm400_vm3, %v418_v6, 0 }
  0x15   : > { %785 = vmatmul.msk.bf16.vlgmr.msra.gmra.mxu0 %vm302_vm0, %v296_v13  ;;  %349 = vmatpush.bf16.msra.mxu2 %v337_v34 }
  0x16   : > { %786 = vmatmul.msk.bf16.vlgmr.msra.gmra.mxu1 %vm302_vm0, %v296_v13 }
  0x18   : > { %787 = vmatmul.msk.bf16.vlgmr.msra.gmra.mxu2 %vm302_vm0, %v296_v13 }
  0x92   : > { %v315_v15 = vpop.f32.mrf.mxu0 }
  0x93   : > { %v333_v16 = vpop.f32.mrf.mxu1  ;;  %v316_v20 = vadd.f32 %v814_v17, %v315_v15 }
  0x94   : > { %v334_v18 = vadd.f32 %v815_v14, %v333_v16 }
  0x95   : > { %v359_v24 = vpack.c.bf16 %v316_v20, %v316_v20 }
  0x96   : > { %v944_v19 = vpack.c.bf16 %v334_v18, %v334_v18 }
  0x98   : > { %522 = vrot.lane.b32.xlu2 %v944_v19, %s848_s29  ;;  %423 = vrot.lane.b32.xlu1 %v944_v19, %s849_s30  ;;  %v367_v21 = vsel %vm362_vm1, %v944_v19, 0 }
  0x99   : > { %376 = vmatpush.bf16.xpose.msra.mxu3 %v367_v21 }
  0x9a   : > { %v317_v22 = vpop.f32.mrf.mxu0 }
  0x9b   : > { %v335_v23 = vpop.f32.mrf.mxu1  ;;  %v351_v60 = vpop.f32.mrf.mxu2 }
  0x9c   : > { %v352_v62 = vadd.f32 %v816_v61, %v351_v60 }
  0x9e   : > { %v997_v0 = vpack.c.bf16 %v352_v62, %v352_v62 }
  0xa0   : > { %520 = vrot.lane.b32.xlu2 %v359_v24, %s848_s29  ;;  %420 = vrot.lane.b32.xlu1 %v359_v24, %s849_s30  ;;  %v402_v1 = vsel %vm400_vm3, %v997_v0, 0 }
  0xa1   : > { %788 = vmatmul.msk.bf16.vlgmr.msra.gmra.mxu3 %vm362_vm1, %v359_v24  ;;  %411 = vmatpush.bf16.msrb.mxu0 %v402_v1 }
  0xa3   : > { %v353_v63 = vpop.f32.mrf.mxu2 }
  0xa5   : > { %514 = vmatpush.bf16.msra.mxu0 %v505_v8 }
  0xa8   : > { %600 = vrot.lane.b32.xlu1 %v359_v24, %s850_s8 }
  0xf2   : > { %v523_v25 = vpop.permute.xlu2 %522 }
  0xf3   : > { %v528_v28 = vsel %vm362_vm1, %v523_v25, 0 }
  0xfa   : > { %v521_v39 = vpop.permute.xlu2 %520 }
 0x10a   : > { %v424_v26 = vpop.permute.xlu1 %423 }
 0x10b   : > { %v429_v27 = vsel %vm362_vm1, %v424_v26, 0 }
 0x10c   : > { %438 = vmatpush.bf16.xpose.msrb.mxu1 %v429_v27 }
 0x112   : > { %v421_v35 = vpop.permute.xlu1 %420 }
 0x113   : > { %790 = vmatmul.msk.bf16.vlgmr.msrb.gmra.mxu1 %vm362_vm1, %v421_v35 }
 0x114   : > { %537 = vmatpush.bf16.xpose.msra.mxu1 %v528_v28 }
 0x11a   : > { %v601_v7 = vpop.permute.xlu1 %600 }
 0x123   : > { %794 = vmatmul.msk.bf16.vlgmr.msra.gmra.mxu1 %vm362_vm1, %v521_v39 }
 0x124   : > { %v378_v40 = vpop.f32.mrf.mxu3 }
 0x125   : > { %v382_v41 = vmul.f32 0.35355338, %v378_v40  ;;  %v292_v40 = vld [vmem:[%s1067_s3 + $0x8] sm:$0xff] }
 0x127   : > { %v384_v42 = vsel %vm383_vm2, -1e+30, %v382_v41  ;;  %v481_v41 = vpack.c.bf16 %v292_v40, %v292_v40 }
 0x128   : > { %v385_v43 = vsel %vm362_vm1, %v384_v42, -inf }
 0x129   : > { %386 = vmax.xlane.f32.xlu0 %v385_v43  ;;  %v293_v43 = vld [vmem:[%s1067_s3 + $0x10] sm:$0xff] }
 0x12c   : > { %v380_v44 = vpop.f32.mrf.mxu3 }
 0x12d   : > { %v579_v44 = vpack.c.bf16 %v293_v43, %v293_v43 }
 0x190   : > { %v440_v45 = vpop.f32.mrf.mxu1 }
 0x191   : > { %v444_v46 = vmul.f32 0.35355338, %v440_v45 }
 0x193   : > { %v445_v47 = vsel %vm383_vm2, -1e+30, %v444_v46 }
 0x194   : > { %v446_v48 = vsel %vm362_vm1, %v445_v47, -inf }
 0x195   : > { %447 = vmax.xlane.f32.xlu2 %v446_v48 }
 0x198   : > { %v442_v49 = vpop.f32.mrf.mxu1 }
 0x19c   : > { %v387_v50 = vpop.xlane.xlu0 %386 }
 0x19d   : > { %v388_v51 = vsub.f32 %v384_v42, %v387_v50  ;;  %v486_v42 = vsel %vm400_vm3, %v481_v41, 0 }
 0x19e   : > { %495 = vmatpush.bf16.msrb.mxu3 %v486_v42 }
 0x19f   : > { %v389_v52 = vmul.f32 1.442695, %v388_v51 }
 0x1a0   : > { %v539_v53 = vpop.f32.mrf.mxu1 }
 0x1a1   : > { %820 = vpow2.f32 %v389_v52  ;;  %v543_v54 = vmul.f32 0.35355338, %v539_v53 }
 0x1a3   : > { %v544_v55 = vsel %vm383_vm2, -1e+30, %v543_v54 }
 0x1a4   : > { %v545_v56 = vsel %vm362_vm1, %v544_v55, -inf }
 0x1a5   : > { %546 = vmax.xlane.f32.xlu1 %v545_v56 }
 0x1a7   : > { %v821_v57 = vpop.eup %820 }
 0x1a8   : > { %v541_v58 = vpop.f32.mrf.mxu1  ;;  %v391_v59 = vsel %vm362_vm1, %v821_v57, 0.0 }
 0x1a9   : > { %392 = vadd.xlane.f32.xlu0 %v391_v59 }
 0x1bd   : > { %602 = vrot.lane.b32.xlu0 %v944_v19, %s850_s8 }
 0x208   : > { %v448_v2 = vpop.xlane.xlu2 %447 }
 0x209   : > { %v449_v3 = vsub.f32 %v445_v47, %v448_v2  ;;  %v584_v47 = vsel %vm400_vm3, %v579_v44, 0 }
 0x20a   : > { %593 = vmatpush.bf16.msra.mxu3 %v584_v47 }
 0x20b   : > { %v450_v4 = vmul.f32 1.442695, %v449_v3 }
 0x20d   : > { %822 = vpow2.f32 %v450_v4 }
 0x213   : > { %v823_v9 = vpop.eup %822 }
 0x214   : > { %v452_v10 = vsel %vm362_vm1, %v823_v9, 0.0 }
 0x215   : > { %453 = vadd.xlane.f32.xlu2 %v452_v10 }
 0x218   : > { %v547_v11 = vpop.xlane.xlu1 %546 }
 0x219   : > { %v548_v13 = vsub.f32 %v544_v55, %v547_v11  ;;  %v294_v11 = vld [vmem:[%s1067_s3 + $0x18] sm:$0xff] }
 0x21b   : > { %v549_v14 = vmul.f32 1.442695, %v548_v13  ;;  %v659_v13 = vpack.c.bf16 %v294_v11, %v294_v11 }
 0x21c   : > { %v393_v15 = vpop.xlane.xlu0 %392 }
 0x21d   : > { %824 = vpow2.f32 %v549_v14  ;;  %v664_v14 = vsel %vm400_vm3, %v659_v13, 0 }
 0x21e   : > { %826 = vrcp.f32 %v393_v15 }
 0x223   : > { %v825_v16 = vpop.eup %824 }
 0x224   : > { %v827_v17 = vpop.eup %826  ;;  %v551_v18 = vsel %vm362_vm1, %v825_v16, 0.0 }
 0x225   : > { %v395_v19 = vmul.f32 %v827_v17, %v821_v57  ;;  %552 = vadd.xlane.f32.xlu1 %v551_v18  ;;  %v817_v17 = vld [vmem:[%s1068_s4] ss:$0 sm:$0xff] }
 0x227   : > { %v396_v20 = vpack.c.bf16 %v395_v19, %v395_v19 }
 0x229   : > { %789 = vmatmul.msk.bf16.vlgmr.msrb.gmra.mxu0 %vm362_vm1, %v396_v20 }
 0x22d   : > { %459 = vrot.lane.b32.xlu2 %v997_v0, %s849_s30 }
 0x22f   : > { %v603_v21 = vpop.permute.xlu0 %602 }
 0x230   : > { %v608_v22 = vsel %vm362_vm1, %v603_v21, 0 }
 0x231   : > { %617 = vmatpush.bf16.xpose.msrb.mxu0 %v608_v22 }
 0x23e   : > { %557 = vrot.lane.b32.xlu1 %v997_v0, %s848_s29 }
 0x288   : > { %v454_v23 = vpop.xlane.xlu2 %453 }
 0x289   : > { %828 = vrcp.f32 %v454_v23 }
 0x28f   : > { %v829_v24 = vpop.eup %828 }
 0x290   : > { %v456_v25 = vmul.f32 %v829_v24, %v823_v9  ;;  %v460_v26 = vpop.permute.xlu2 %459  ;;  %v851_v24 = vmov 32.0  }
 0x291   : > { %v465_v27 = vsel %vm400_vm3, %v460_v26, 0 }
 0x292   : > { %474 = vmatpush.bf16.msrb.mxu2 %v465_v27  ;;  %v457_v28 = vpack.c.bf16 %v456_v25, %v456_v25 }
 0x295   : > { %791 = vmatmul.msk.bf16.vlgmr.msrb.gmra.mxu2 %vm362_vm1, %v457_v28 }
 0x298   : > { %v553_v29 = vpop.xlane.xlu1 %552 }
 0x299   : > { %830 = vrcp.f32 %v553_v29 }
 0x29f   : > { %v831_v32 = vpop.eup %830 }
 0x2a0   : > { %v555_v34 = vmul.f32 %v831_v32, %v825_v16 }
 0x2a2   : > { %v556_v39 = vpack.c.bf16 %v555_v34, %v555_v34 }
 0x2a6   : > { %v413_v30 = vpop.f32.mrf.mxu0 }
 0x2a7   : > { %v417_v31 = vpack.c.bf16 %v413_v30, %v413_v30 }
 0x2a9   : > { %793 = vmatmul.msk.bf16.vlgmr.msra.gmra.mxu0 %vm362_vm1, %v417_v31 }
 0x2ae   : > { %v415_v33 = vpop.f32.mrf.mxu0 }
 0x2b0   : > { %v558_v35 = vpop.permute.xlu1 %557 }
 0x2b1   : > { %v563_v36 = vsel %vm400_vm3, %v558_v35, 0 }
 0x2b2   : > { %572 = vmatpush.bf16.msra.mxu2 %v563_v36 }
 0x2b5   : > { %795 = vmatmul.msk.bf16.vlgmr.msra.gmra.mxu2 %vm362_vm1, %v556_v39 }
 0x2b6   : > { %673 = vmatpush.bf16.msrb.mxu2 %v664_v14 }
 0x2b9   : > { %797 = vmatmul.msk.bf16.vlgmr.msrb.gmra.mxu0 %vm362_vm1, %v601_v7 }
 0x318   : > { %v476_v45 = vpop.f32.mrf.mxu2 }
 0x319   : > { %v480_v46 = vpack.c.bf16 %v476_v45, %v476_v45 }
 0x31b   : > { %792 = vmatmul.msk.bf16.vlgmr.msrb.gmra.mxu3 %vm362_vm1, %v480_v46  ;;  %v818_v46 = vld [vmem:[%s1069_s5] ss:$0 sm:$0xff] }
 0x320   : > { %v478_v48 = vpop.f32.mrf.mxu2 }
 0x321   : > { %v819_v48 = vld [vmem:[%s1070_s6] ss:$0 sm:$0xff] }
 0x326   : > { %v516_v49 = vpop.f32.mrf.mxu0 }
 0x32e   : > { %v518_v50 = vpop.f32.mrf.mxu0 }
 0x336   : > { %v619_v51 = vpop.f32.mrf.mxu0 }
 0x337   : > { %v623_v52 = vmul.f32 0.35355338, %v619_v51 }
 0x338   : > { %v574_v53 = vpop.f32.mrf.mxu2 }
 0x339   : > { %v578_v54 = vpack.c.bf16 %v574_v53, %v574_v53  ;;  %v624_v55 = vsel %vm383_vm2, -1e+30, %v623_v52 }
 0x33a   : > { %v625_v56 = vsel %vm362_vm1, %v624_v55, -inf }
 0x33b   : > { %626 = vmax.xlane.f32.xlu0 %v625_v56  ;;  %796 = vmatmul.msk.bf16.vlgmr.msra.gmra.mxu3 %vm362_vm1, %v578_v54 }
 0x33e   : > { %v621_v57 = vpop.f32.mrf.mxu0 }
 0x340   : > { %v576_v58 = vpop.f32.mrf.mxu2 }
 0x39e   : > { %v497_v59 = vpop.f32.mrf.mxu3 }
 0x39f   : > { %v517_v3 = vadd.f32 %v516_v49, %v497_v59 }
 0x3a6   : > { %v499_v60 = vpop.f32.mrf.mxu3 }
 0x3ae   : > { %v627_v61 = vpop.xlane.xlu0 %626 }
 0x3af   : > { %v628_v62 = vsub.f32 %v624_v55, %v627_v61 }
 0x3b1   : > { %v629_v63 = vmul.f32 1.442695, %v628_v62 }
 0x3b3   : > { %832 = vpow2.f32 %v629_v63 }
 0x3b9   : > { %v833_v1 = vpop.eup %832 }
 0x3ba   : > { %v631_v2 = vsel %vm362_vm1, %v833_v1, 0.0 }
 0x3bb   : > { %632 = vadd.xlane.f32.xlu0 %v631_v2 }
 0x3be   : > { %v595_v37 = vpop.f32.mrf.mxu3 }
 0x3bf   : > { %v599_v38 = vadd.f32 %v595_v37, %v517_v3 }
 0x3c6   : > { %v597_v4 = vpop.f32.mrf.mxu3 }
 0x3cf   : > { %637 = vrot.lane.b32.xlu0 %v997_v0, %s850_s8 }
 0x42e   : > { %v633_v5 = vpop.xlane.xlu0 %632 }
 0x42f   : > { %834 = vrcp.f32 %v633_v5 }
 0x430   : > { %836 = vrcp.f32 %v851_v24 }
 0x435   : > { %v835_v6 = vpop.eup %834 }
 0x436   : > { %v635_v7 = vmul.f32 %v835_v6, %v833_v1  ;;  %v837_v25 = vpop.eup %836 }
 0x437   : > { %v691_v26 = vmul.f32 32.0, %v837_v25  ;;  %vm695_vm4 = vweird.f32 %v837_v25 }
 0x438   : > { %v636_v10 = vpack.c.bf16 %v635_v7, %v635_v7 }
 0x439   : > { %v692_v27 = vsub.f32 1.0, %v691_v26 }
 0x43b   : > { %v693_v28 = vmul.f32 %v837_v25, %v692_v27 }
 0x43d   : > { %v694_v29 = vadd.f32 %v837_v25, %v693_v28 }
 0x43f   : > { %v696_v30 = vsel %vm695_vm4, %v837_v25, %v694_v29 }
 0x441   : > { %v638_v8 = vpop.permute.xlu0 %637 }
 0x442   : > { %v643_v9 = vsel %vm400_vm3, %v638_v8, 0 }
 0x443   : > { %652 = vmatpush.bf16.msrb.mxu1 %v643_v9 }
 0x446   : > { %798 = vmatmul.msk.bf16.vlgmr.msrb.gmra.mxu1 %vm362_vm1, %v636_v10 }
 0x4c3   : > { %v654_v0 = vpop.f32.mrf.mxu1 }
 0x4c4   : > { %v658_v15 = vpack.c.bf16 %v654_v0, %v654_v0 }
 0x4c6   : > { %799 = vmatmul.msk.bf16.vlgmr.msrb.gmra.mxu2 %vm362_vm1, %v658_v15 }
 0x4cb   : > { %v656_v16 = vpop.f32.mrf.mxu1 }
 0x549   : > { %v675_v18 = vpop.f32.mrf.mxu2 }
 0x54a   : > { %v679_v19 = vadd.f32 %v675_v18, %v599_v38 }
 0x54c   : > { %v683_v20 = vadd.f32 %v817_v17, %v679_v19 }
 0x54e   : > { %v684_v21 = vadd.f32 %v683_v20, %v932_v12 }
 0x550   : > { %v687_v22 = vsel %vm302_vm0, %v684_v21, 0.0 }
 0x551   : > { %v677_v23 = vpop.f32.mrf.mxu2  ;;  %688 = vadd.xlane.f32.xlu2 %v687_v22 }
 0x5c4   : > { %v689_v31 = vpop.xlane.xlu2 %688 }
 0x5c5   : > { %v697_v32 = vmul.f32 %v696_v30, %v689_v31 }
 0x5c7   : > { %v698_v33 = vsub.f32 %v684_v21, %v697_v32 }
 0x5c9   : > { %v699_v34 = vmul.f32 %v698_v33, %v698_v33 }
 0x5cb   : > { %v700_v35 = vsel %vm302_vm0, %v699_v34, 0.0 }
 0x5cc   : > { %701 = vadd.xlane.f32.xlu1 %v700_v35 }
 0x63f   : > { %v702_v12 = vpop.xlane.xlu1 %701 }
 0x640   : > { %v703_v36 = vmul.f32 %v702_v12, %v696_v30 }
 0x642   : > { %v704_v39 = vadd.f32 1e-05, %v703_v36 }
 0x644   : > { %838 = vrsqrt.f32 %v704_v39  ;;  %vm711_vm6 = vweird.f32 %v704_v39 }
 0x64a   : > { %v839_v40 = vpop.eup %838 }
 0x64b   : > { %v706_v41 = vmul.f32 %v839_v40, %v704_v39  ;;  %vm712_vm5 = vweird.f32 %v839_v40 }
 0x64c   : > { %vm713_vm7 = vmor %vm711_vm6, %vm712_vm5 }
 0x64d   : > { %v707_v42 = vmul.f32 %v839_v40, %v706_v41 }
 0x64f   : > { %v708_v43 = vmul.f32 0.5, %v707_v42 }
 0x651   : > { %v709_v44 = vsub.f32 1.5, %v708_v43 }
 0x653   : > { %v710_v45 = vmul.f32 %v839_v40, %v709_v44 }
 0x655   : > { %v714_v47 = vsel %vm713_vm7, %v839_v40, %v710_v45 }
 0x656   : > { %v715_v49 = vmul.f32 %v714_v47, %v698_v33 }
 0x658   : > { %v719_v50 = vmul.f32 %v818_v46, %v715_v49 }
 0x65a   : > { %v723_v51 = vadd.f32 %v819_v48, %v719_v50 }
 0x65c   : > { %724 = vst.msk [vmem:[%s273_s15] sm:$0xff] %vm302_vm0, %v723_v51 }
 0x65d PF: > { %s17_s24 = sadd.s32 1, %s846_s24  }
 0x65e   : > { %p14_p4 = scmp.ge.s32.totalorder %s17_s24, 4  }
 0x660   :  { %16 = sbr.rel (!%p14_p4) target bundleno = 1 (0x1), region = 78 }

// kernel: _lambda_.13
= control target key start
LH: loop header
LB: loop body
LE: loop exit
PB: predicated region body
PF: predicated region fallthrough
CT: control target
= control target key end

     0   :  { %vm20_vm0 = vcmask 523264   ;;  %v120_v5 = vmov 0.0   ;;  %s174_s0 = inlined_call_operand.vmem [shape: f32[16,32], index: 0, kind: input, shape index: {}]   ;;  %s175_s1 = inlined_call_operand.vmem [shape: f32[32,64], index: 1, kind: input, shape index: {}]   ;;  %s176_s2 = inlined_call_operand.vmem [shape: f32[1,64], index: 2, kind: input, shape index: {}]   ;;  %s177_s3 = inlined_call_operand.hbm [shape: f32[16,64], index: 3, kind: output, shape index: {}]  }
   0x1   :  { %v30_v0 = vld [vmem:[%s175_s1 + $0x10] sm:$0xff]  ;;  %v31_v1 = vld [vmem:[%s175_s1 + $0x18] sm:$0xff]  ;;  %v28_v2 = vld [vmem:[%s175_s1] sm:$0xff]  ;;  %21 = vst.msk [vmem:[#allocation2] sm:$0xff] %vm20_vm0, %v120_v5 }
   0x2   :  { %v33_v3 = vpack.c.bf16 %v31_v1, %v30_v0  ;;  %v29_v4 = vld [vmem:[%s175_s1 + $0x8] sm:$0xff]  ;;  %22 = vst.msk [vmem:[#allocation2 + $0x8] sm:$0xff] %vm20_vm0, %v120_v5 }
   0x3   :  { %8 = vsyncpa [#allocation4], 0  ;;  %v32_v6 = vpack.c.bf16 %v29_v4, %v28_v2  ;;  %v25_v7 = vld [vmem:[%s174_s0] sm:$0xff]  ;;  %v26_v8 = vld [vmem:[%s174_s0 + $0x8] sm:$0xff]  ;;  %vm34_vm1 = vcmask 261120   ;;  %s121_s0 = smov [#allocation3]  }
   0x4   :  { %44 = vmatpush.bf16.msra.mxu0 %v33_v3  ;;  %v27_v9 = vpack.c.bf16 %v26_v8, %v25_v7  ;;  %v93_v14 = vld [vmem:[%s176_s2] ss:$0 sm:$0xff]  ;;  %s74_s25 = sshll.u32 %s121_s0, 4  ;;  %s76_s28 = sshll.u32 %s177_s3, 4  ;;  %s75_s25 = int_to_ptr.vmem [resolvable:$true] %s74_s25  ;;  %s77_s28 = int_to_ptr.hbm [resolvable:$true] %s76_s28 }
   0x5   :  { %s122_s2 = smov 128   ;;  %s123_s29 = smov 8  }
   0x8   :  { %45 = vmatpush.bf16.msra.mxu0 %v32_v6  ;;  %v23_v10 = vld [vmem:[#allocation2] sm:$0xff] }
   0x9   :  { %v24_v13 = vld [vmem:[#allocation2 + $0x8] sm:$0xff] }
   0xb   :  { %88 = vmatmul.msk.bf16.vlgmr.msra.gmra.mxu0 %vm34_vm1, %v27_v9 }
  0x88   :  { %v47_v11 = vpop.f32.mrf.mxu0 }
  0x89   :  { %v52_v12 = vadd.f32 %v47_v11, %v23_v10 }
  0x8b   :  { %55 = vst.msk [vmem:[#allocation2] sm:$0xff] %vm20_vm0, %v52_v12 }
  0x90   :  { %v49_v15 = vpop.f32.mrf.mxu0 }
  0x91   :  { %v53_v16 = vadd.f32 %v49_v15, %v24_v13 }
  0x92   :  { %v60_v17 = vld [vmem:[#allocation2] sm:$0xff] }
  0x93   :  { %56 = vst.msk [vmem:[#allocation2 + $0x8] sm:$0xff] %vm20_vm0, %v53_v16  ;;  %v66_v18 = vadd.f32 %v93_v14, %v60_v17 }
  0x95   :  { %68 = vst.msk [vmem:[#allocation3] sm:$0xff] %vm20_vm0, %v66_v18 }
  0x9a   :  { %v61_v19 = vld [vmem:[#allocation2 + $0x8] sm:$0xff] }
  0x9b   :  { %v67_v20 = vadd.f32 %v93_v14, %v61_v19 }
  0x9d   :  { %69 = vst.msk [vmem:[#allocation3 + $0x8] sm:$0xff] %vm20_vm0, %v67_v20 }
  0x9e   :  { %82 = dma.vmem_to_hbm [thread:$0]  %s75_s25, 256, %s77_s28, [#allocation4], %s122_s2, %s122_s2, %s123_s29  }
  0x9f   :  { %118 = dma.done.wait [#allocation4], 256  }
  0xa0   :  { %119 = vsyncadd [#allocation4], 4294967040 }
  0xa1   :  { %87 = vsyncpa [#allocation4], 1 }

// kernel: _lambda_.9
= control target key start
LH: loop header
LB: loop body
LE: loop exit
PB: predicated region body
PF: predicated region fallthrough
CT: control target
= control target key end

     0   :  { %s1023_s27 = smov 0   ;;  %s1025_s28 = smov 0   ;;  %s1176_s0 = inlined_call_operand.vmem [shape: f32[2,8,32], index: 0, kind: input, shape index: {}]   ;;  %s1177_s1 = inlined_call_operand.vmem [shape: f32[4,2,8,1], index: 1, kind: input, shape index: {}]   ;;  %s1178_s2 = inlined_call_operand.vmem [shape: f32[4,3,32,32], index: 2, kind: input, shape index: {}]   ;;  %s1179_s3 = inlined_call_operand.vmem [shape: f32[4,3,1,32], index: 3, kind: input, shape index: {}]   ;;  %s1180_s4 = inlined_call_operand.vmem [shape: f32[4,2,16,32], index: 4, kind: input, shape index: {}]   ;;  %s1181_s5 = inlined_call_operand.vmem [shape: f32[4,1,32], index: 5, kind: input, shape index: {}]   ;;  %s1182_s6 = inlined_call_operand.vmem [shape: f32[1,32], index: 6, kind: input, shape index: {}]   ;;  %s1183_s7 = inlined_call_operand.vmem [shape: f32[1,32], index: 7, kind: input, shape index: {}]   ;;  %s1184_s8 = inlined_call_operand.vmem [shape: f32[2,8,32], index: 8, kind: output, shape index: {}]  }
   0x1   :  { %1186 = sst [smem:[#allocation6_spill]] %s1176_s0  ;;  %s1027_s29 = smov 0  }
   0x2   :  { %1187 = sst [smem:[#allocation7_spill]] %s1177_s1  ;;  %s1029_s30 = smov 0  }
   0x3   :  { %s1031_s9 = smov 0  }
   0x4 LB: > { %1188 = sst [smem:[#allocation3_spill]] %s968_s30  ;;  %s27_s10 = sadd.s32 1, %s964_s29  ;;  %s972_s9 = sphi %s1031_s9, %s18_s9   ;;  %s968_s30 = sphi %s1029_s30, %s1195_s30   ;;  %s964_s29 = sphi %s1027_s29, %s1197_s29   ;;  %s960_s28 = sphi %s1025_s28, %s1193_s28   ;;  %s956_s27 = sphi %s1023_s27, %s1196_s27  }
   0x5   : > { %s30_s11 = sadd.s32 1, %s968_s30  ;;  %p28_p0 = scmp.ge.s32.totalorder %s27_s10, 4 }
   0x6   : > { %p846_p1 = scmp.ge.s32.totalorder %s972_s9, 1  ;;  %p325_p2 = scmp.lt.s32.totalorder %s972_s9, 9 }
   0x7   : > { %s1199_s10 = smov (%p28_p0, %s27_s10), 0  ;;  %s1201_s11 = smov (!%p28_p0, %s30_s11), %s968_s30 }
   0x8   : > { %1189 = sst [smem:[#allocation4_spill]] %s1199_s10  ;;  %p326_p3 = pnand %p846_p1, %p325_p2 }
   0x9   : > { %p32_p4 = scmp.ge.s32.totalorder %s1201_s11, 2  ;;  %p382_p5 = scmp.lt.s32.totalorder (!%p326_p3), %s960_s28, 1 }
   0xa   : > { %329 = sbr.rel (%p326_p3) target bundleno = 1233 (0x4d1), region = 52  ;;  %p386_p6 = scmp.lt.s32.totalorder (!%p326_p3), %s956_s27, 3 }
   0xb   : > { %s1203_s11 = smov (%p32_p4, %s1201_s11), 0  ;;  %s1191_s0 = sld [smem:[#allocation6_spill]] (!%p326_p3) }
   0xc   : > { %1190 = sst [smem:[#allocation5_spill]] %s1203_s11  ;;  %p854_p7 = scmp.ne.s32.totalorder (!%p326_p3), %s956_s27, 0 }
   0xd   : > { %s1192_s1 = sld [smem:[#allocation7_spill]] (!%p326_p3) }
   0xf   : > { %s1205_s28 = smov (!%p382_p5, %s960_s28), 1 }
  0x10   : > { %s1057_s12 = scalar_select %p386_p6, %s956_s27, 3 }
  0x11   : > { %s847_s13 = sshll.u32 %s1205_s28, 3 }
  0x12   : > { %s1062_s16 = scalar_lea.vmem %s1191_s0, %s847_s13  ;;  %s848_s17 = sshll.u32 %s1057_s12, 1 }
  0x13   : > { %s391_s18 = sadd.s32 %s848_s17, %s1205_s28  ;;  %s868_s19 = smul.u32 96, %s1057_s12 }
  0x14   : > { %s849_s20 = sshll.u32 %s391_s18, 3  ;;  %s869_s21 = smul.u32 3, %s1057_s12 }
  0x15   : > { %s1070_s24 = scalar_lea.vmem %s1192_s1, %s849_s20  ;;  %s1075_s11 = scalar_lea.vmem %s1178_s2, %s868_s19 }
  0x16   : > { %s1080_s14 = scalar_lea.vmem %s1179_s3, %s869_s21  ;;  %s867_s15 = sshll.u32 %s1057_s12, 5 }
  0x17   : > { %s1086_s18 = scalar_lea.vmem %s1180_s4, %s867_s15  ;;  %s410_s20 = scalar_lea.vmem %s1181_s5, %s1057_s12 }
  0x18   : > { %s1095_s19 = scalar_lea.vmem %s1184_s8, %s847_s13  ;;  %419 = sbr.rel (%p854_p7) target bundleno = 31 (0x1f), region = 56 }
  0x1d   : > { %vm420_vm0 = vcmask 261120   ;;  %v974_v0 = vmov 0.0  }
  0x1e   : > { %421 = vst.msk [vmem:[#allocation2] sm:$0xff] %vm420_vm0, %v974_v0 }
  0x1f PF: > { %v425_v1 = vld [vmem:[%s1075_s11 + $0x10] sm:$0xff]  ;;  %v426_v2 = vld [vmem:[%s1075_s11 + $0x18] sm:$0xff]  ;;  %v423_v6 = vld [vmem:[%s1075_s11] sm:$0xff]  ;;  %vm449_vm1 = vcmask 261120   ;;  %vm505_vm2 = vcmask 130048   ;;  %s975_s0 = smov 112  }
  0x20   : > { %v429_v3 = vld [vmem:[%s1075_s11 + $0x30] sm:$0xff]  ;;  %v445_v4 = vpack.c.bf16 %v426_v2, %v425_v1  ;;  %v430_v5 = vld [vmem:[%s1075_s11 + $0x38] sm:$0xff]  ;;  %v424_v7 = vld [vmem:[%s1075_s11 + $0x8] sm:$0xff]  ;;  %vm526_vm3 = vcmask 64512   ;;  %vm542_vm4 = vcmask 1043456   ;;  %p864_p8 = scmp.ne.s32.totalorder %s956_s27, 3 }
  0x21   : > { %v467_v8 = vpack.c.bf16 %v430_v5, %v429_v3  ;;  %v427_v9 = vld [vmem:[%s1075_s11 + $0x20] sm:$0xff]  ;;  %v428_v10 = vld [vmem:[%s1075_s11 + $0x28] sm:$0xff]  ;;  %v444_v11 = vpack.c.bf16 %v424_v7, %v423_v6  ;;  %v433_v31 = vld [vmem:[%s1075_s11 + $0x50] sm:$0xff] }
  0x22   : > { %459 = vmatpush.bf16.msra.mxu0 %v445_v4  ;;  %v1107_v12 = vld [vmem:[%s1062_s16] sm:$0xff]  ;;  %v466_v13 = vpack.c.bf16 %v428_v10, %v427_v9  ;;  %v434_v32 = vld [vmem:[%s1075_s11 + $0x58] sm:$0xff]  ;;  %v432_v35 = vld [vmem:[%s1075_s11 + $0x48] sm:$0xff] }
  0x23   : > { %477 = vmatpush.bf16.msra.mxu1 %v467_v8  ;;  %v443_v14 = vpack.c.bf16 %v1107_v12, %v1107_v12  ;;  %v917_v15 = vld [vmem:[%s1080_s14 + $0x1] ss:$0 sm:$0xff]  ;;  %v916_v18 = vld [vmem:[%s1080_s14] ss:$0 sm:$0xff]  ;;  %v485_v33 = vpack.c.bf16 %v434_v32, %v433_v31  ;;  %v918_v43 = vld [vmem:[%s1080_s14 + $0x2] ss:$0 sm:$0xff] }
  0x24   : > { %v431_v34 = vld [vmem:[%s1075_s11 + $0x40] sm:$0xff]  ;;  %v440_v5 = vld [vmem:[%s1086_s18 + $0x10] sm:$0xff]  ;;  %v441_v6 = vld [vmem:[%s1086_s18 + $0x18] sm:$0xff] }
  0x25   : > { %495 = vmatpush.bf16.msra.mxu2 %v485_v33  ;;  %v484_v36 = vpack.c.bf16 %v432_v35, %v431_v34  ;;  %v622_v7 = vpack.c.bf16 %v441_v6, %v440_v5  ;;  %v438_v8 = vld [vmem:[%s1086_s18] sm:$0xff]  ;;  %v439_v9 = vld [vmem:[%s1086_s18 + $0x8] sm:$0xff] }
  0x26   : > { %460 = vmatpush.bf16.msra.mxu0 %v444_v11  ;;  %v560_v10 = vpack.c.bf16 %v439_v9, %v438_v8  ;;  %v659_v11 = vld [vmem:[%s1070_s24] sm:$0xff] }
  0x27   : > { %478 = vmatpush.bf16.msra.mxu1 %v466_v13  ;;  %v976_v13 = vmov 0  }
  0x28   : > { %914 = vset.pattern.permute.xlu1 %v976_v13  ;;  %915 = vset.pattern.permute.xlu0 %v976_v13 }
  0x29   : > { %855 = vmatmul.msk.bf16.vlgmr.msra.gmra.mxu0 %vm449_vm1, %v443_v14  ;;  %496 = vmatpush.bf16.msra.mxu2 %v484_v36 }
  0x2a   : > { %856 = vmatmul.msk.bf16.vlgmr.msra.gmra.mxu1 %vm449_vm1, %v443_v14 }
  0x2c   : > { %857 = vmatmul.msk.bf16.vlgmr.msra.gmra.mxu2 %vm449_vm1, %v443_v14 }
  0xa6   : > { %v462_v16 = vpop.f32.mrf.mxu0 }
  0xa7   : > { %v480_v17 = vpop.f32.mrf.mxu1  ;;  %v463_v21 = vadd.f32 %v916_v18, %v462_v16 }
  0xa8   : > { %v481_v19 = vadd.f32 %v917_v15, %v480_v17 }
  0xa9   : > { %v502_v25 = vpack.c.bf16 %v463_v21, %v463_v21  ;;  %v919_v21 = vld [vmem:[%s410_s20] ss:$0 sm:$0xff] }
  0xaa   : > { %v503_v20 = vpack.c.bf16 %v481_v19, %v481_v19 }
  0xac   : > { %565 = vrot.lane.b32.xlu0 %v503_v20, %s975_s0  ;;  %v510_v22 = vsel %vm505_vm2, %v503_v20, 0 }
  0xad   : > { %519 = vmatpush.bf16.xpose.msra.mxu3 %v510_v22 }
  0xae   : > { %v464_v23 = vpop.f32.mrf.mxu0 }
  0xaf   : > { %v482_v24 = vpop.f32.mrf.mxu1  ;;  %v498_v46 = vpop.f32.mrf.mxu2 }
  0xb0   : > { %v499_v47 = vadd.f32 %v918_v43, %v498_v46 }
  0xb2   : > { %v504_v49 = vpack.c.bf16 %v499_v47, %v499_v47 }
  0xb4   : > { %562 = vrot.lane.b32.xlu0 %v502_v25, %s975_s0  ;;  %858 = vmatmul.msk.bf16.vlgmr.msra.gmra.mxu3 %vm505_vm2, %v502_v25  ;;  %v544_v50 = vsel %vm542_vm4, %v504_v49, 0 }
  0xb5   : > { %553 = vmatpush.bf16.msrb.mxu0 %v544_v50  ;;  %633 = vmatpush.bf16.msrb.mxu3 %v622_v7 }
  0xb7   : > { %v500_v53 = vpop.f32.mrf.mxu2 }
  0xb9   : > { %649 = vmatpush.bf16.msra.mxu0 %v560_v10 }
 0x11e   : > { %v566_v26 = vpop.permute.xlu0 %565 }
 0x11f   : > { %v571_v27 = vsel %vm505_vm2, %v566_v26, 0 }
 0x120   : > { %580 = vmatpush.bf16.xpose.msrb.mxu1 %v571_v27  ;;  %v660_v27 = vld [vmem:[#allocation2] sm:$0xff] }
 0x126   : > { %v563_v28 = vpop.permute.xlu0 %562 }
 0x127   : > { %860 = vmatmul.msk.bf16.vlgmr.msrb.gmra.mxu1 %vm505_vm2, %v563_v28 }
 0x137   : > { %v521_v29 = vpop.f32.mrf.mxu3 }
 0x138   : > { %v525_v40 = vmul.f32 0.25, %v521_v29 }
 0x13a   : > { %v527_v42 = vsel %vm526_vm3, %v525_v40, -inf }
 0x13f   : > { %v523_v30 = vpop.f32.mrf.mxu3 }
 0x1a4   : > { %v582_v37 = vpop.f32.mrf.mxu1 }
 0x1a5   : > { %v586_v38 = vmul.f32 0.25, %v582_v37 }
 0x1a7   : > { %v587_v39 = vsel %vm526_vm3, %v586_v38, -inf }
 0x1a8   : > { %588 = vmax.xlane.f32.xlu1 %v587_v39 }
 0x1ac   : > { %v584_v41 = vpop.f32.mrf.mxu1 }
 0x1b0   : > { %528 = vmax.xlane.f32.xlu1 %v527_v42 }
 0x1c9   : > { %663 = vperm.xlu1 %914, %v659_v11  }
 0x21b   : > { %v589_v44 = vpop.xlane.xlu1 %588 }
 0x21c   : > { %v590_v45 = vsub.f32 %v586_v38, %v589_v44 }
 0x21e   : > { %v591_v48 = vmul.f32 1.442695, %v590_v45 }
 0x220   : > { %920 = vpow2.f32 %v591_v48 }
 0x223   : > { %v529_v51 = vpop.xlane.xlu1 %528 }
 0x224   : > { %v530_v52 = vsub.f32 %v525_v40, %v529_v51 }
 0x226   : > { %v921_v54 = vpop.eup %920  ;;  %v531_v55 = vmul.f32 1.442695, %v530_v52 }
 0x227   : > { %v593_v56 = vsel %vm526_vm3, %v921_v54, 0.0 }
 0x228   : > { %922 = vpow2.f32 %v531_v55  ;;  %594 = vadd.xlane.f32.xlu2 %v593_v56 }
 0x22e   : > { %v923_v57 = vpop.eup %922 }
 0x22f   : > { %v533_v58 = vsel %vm526_vm3, %v923_v57, 0.0 }
 0x230   : > { %534 = vadd.xlane.f32.xlu0 %v533_v58 }
 0x23b   : > { %v664_v24 = vpop.permute.xlu1 %663 }
 0x240   : > { %600 = vrot.lane.b32.xlu2 %v504_v49, %s975_s0 }
 0x29b   : > { %v595_v59 = vpop.xlane.xlu2 %594 }
 0x29c   : > { %924 = vrcp.f32 %v595_v59 }
 0x2a2   : > { %v925_v60 = vpop.eup %924 }
 0x2a3   : > { %v597_v61 = vmul.f32 %v925_v60, %v921_v54  ;;  %v601_v62 = vpop.permute.xlu2 %600  ;;  %v535_v63 = vpop.xlane.xlu0 %534 }
 0x2a4   : > { %926 = vrcp.f32 %v535_v63  ;;  %v606_v0 = vsel %vm542_vm4, %v601_v62, 0 }
 0x2a5   : > { %615 = vmatpush.bf16.msrb.mxu2 %v606_v0  ;;  %v598_v1 = vpack.c.bf16 %v597_v61, %v597_v61 }
 0x2a8   : > { %861 = vmatmul.msk.bf16.vlgmr.msrb.gmra.mxu2 %vm526_vm3, %v598_v1 }
 0x2aa   : > { %v927_v2 = vpop.eup %926 }
 0x2ab   : > { %v537_v3 = vmul.f32 %v927_v2, %v923_v57 }
 0x2ad   : > { %v538_v4 = vpack.c.bf16 %v537_v3, %v537_v3 }
 0x2af   : > { %859 = vmatmul.msk.bf16.vlgmr.msrb.gmra.mxu0 %vm526_vm3, %v538_v4 }
 0x32b   : > { %v617_v14 = vpop.f32.mrf.mxu2 }
 0x32c   : > { %v621_v15 = vpack.c.bf16 %v617_v14, %v617_v14  ;;  %v555_v16 = vpop.f32.mrf.mxu0 }
 0x32d   : > { %v559_v17 = vpack.c.bf16 %v555_v16, %v555_v16 }
 0x32e   : > { %862 = vmatmul.msk.bf16.vlgmr.msrb.gmra.mxu3 %vm505_vm2, %v621_v15 }
 0x32f   : > { %863 = vmatmul.msk.bf16.vlgmr.msra.gmra.mxu0 %vm505_vm2, %v559_v17 }
 0x333   : > { %v619_v18 = vpop.f32.mrf.mxu2 }
 0x334   : > { %v557_v19 = vpop.f32.mrf.mxu0 }
 0x3ac   : > { %v651_v20 = vpop.f32.mrf.mxu0 }
 0x3b1   : > { %v635_v22 = vpop.f32.mrf.mxu3 }
 0x3b2   : > { %v652_v23 = vadd.f32 %v651_v20, %v635_v22 }
 0x3b4   : > { %v653_v25 = vpop.f32.mrf.mxu0  ;;  %v658_v26 = vadd.f32 %v919_v21, %v652_v23 }
 0x3b6   : > { %v666_v28 = vmul.f32 %v664_v24, %v658_v26  ;;  %672 = sbr.rel (%p864_p8) target bundleno = 1233 (0x4d1), region = 60 }
 0x3b8   : > { %v667_v29 = vadd.f32 %v666_v28, %v660_v27 }
 0x3b9   : > { %v637_v30 = vpop.f32.mrf.mxu3 }
 0x3ba   : > { %668 = vst.msk [vmem:[#allocation2] sm:$0xff] %vm449_vm1, %v667_v29 }
 0x3bb   : > { %v977_v34 = vmov 32.0   ;;  %v928_v54 = vld [vmem:[%s1182_s6] ss:$0 sm:$0xff] }
 0x3bc   : > { %930 = vrcp.f32 %v977_v34  ;;  %v929_v56 = vld [vmem:[%s1183_s7] ss:$0 sm:$0xff] }
 0x3c1   : > { %v673_v31 = vld [vmem:[#allocation2] sm:$0xff] }
 0x3c2   : > { %v674_v32 = vadd.f32 %v673_v31, %v1107_v12  ;;  %v931_v35 = vpop.eup %930 }
 0x3c3   : > { %v681_v36 = vmul.f32 32.0, %v931_v35  ;;  %vm685_vm5 = vweird.f32 %v931_v35 }
 0x3c4   : > { %v677_v33 = vsel %vm449_vm1, %v674_v32, 0.0 }
 0x3c5   : > { %678 = vadd.xlane.f32.xlu0 %v677_v33  ;;  %v682_v37 = vsub.f32 1.0, %v681_v36 }
 0x3c7   : > { %v683_v38 = vmul.f32 %v931_v35, %v682_v37 }
 0x3c9   : > { %v684_v39 = vadd.f32 %v931_v35, %v683_v38 }
 0x3cb   : > { %v686_v40 = vsel %vm685_vm5, %v931_v35, %v684_v39 }
 0x438   : > { %v679_v41 = vpop.xlane.xlu0 %678 }
 0x439   : > { %v687_v42 = vmul.f32 %v686_v40, %v679_v41 }
 0x43b   : > { %v688_v43 = vsub.f32 %v674_v32, %v687_v42 }
 0x43d   : > { %v689_v44 = vmul.f32 %v688_v43, %v688_v43 }
 0x43f   : > { %v690_v45 = vsel %vm449_vm1, %v689_v44, 0.0 }
 0x440   : > { %691 = vadd.xlane.f32.xlu0 %v690_v45 }
 0x4b3   : > { %v692_v12 = vpop.xlane.xlu0 %691 }
 0x4b4   : > { %v693_v46 = vmul.f32 %v692_v12, %v686_v40 }
 0x4b6   : > { %v694_v47 = vadd.f32 1e-05, %v693_v46 }
 0x4b8   : > { %932 = vrsqrt.f32 %v694_v47  ;;  %vm701_vm7 = vweird.f32 %v694_v47 }
 0x4be   : > { %v933_v48 = vpop.eup %932 }
 0x4bf   : > { %v696_v49 = vmul.f32 %v933_v48, %v694_v47  ;;  %vm702_vm6 = vweird.f32 %v933_v48 }
 0x4c0   : > { %vm703_vm8 = vmor %vm701_vm7, %vm702_vm6 }
 0x4c1   : > { %v697_v50 = vmul.f32 %v933_v48, %v696_v49 }
 0x4c3   : > { %v698_v51 = vmul.f32 0.5, %v697_v50 }
 0x4c5   : > { %v699_v52 = vsub.f32 1.5, %v698_v51 }
 0x4c7   : > { %v700_v53 = vmul.f32 %v933_v48, %v699_v52 }
 0x4c9   : > { %v704_v55 = vsel %vm703_vm8, %v933_v48, %v700_v53 }
 0x4ca   : > { %v705_v57 = vmul.f32 %v704_v55, %v688_v43 }
 0x4cc   : > { %v709_v58 = vmul.f32 %v928_v54, %v705_v57 }
 0x4ce   : > { %v713_v59 = vadd.f32 %v929_v56, %v709_v58 }
 0x4d0   : > { %714 = vst.msk [vmem:[%s1095_s19] sm:$0xff] %vm449_vm1, %v713_v59 }
 0x4d1 PF: > { %s18_s9 = sadd.s32 1, %s972_s9   ;;  %s1193_s28 = sld [smem:[#allocation3_spill]] }
 0x4d2   : > { %p15_p9 = scmp.ge.s32.totalorder %s18_s9, 10   ;;  %s1194_s13 = sld [smem:[#allocation4_spill]] }
 0x4d3   : > { %s1195_s30 = sld [smem:[#allocation5_spill]]  ;;  %s1196_s27 = smov %s964_s29 }
 0x4d4   :  { %17 = sbr.rel (!%p15_p9) target bundleno = 4 (0x4), region = 105 }
 0x4d8   : > { %s1197_s29 = smov %s1194_s13 }

</bundles_post_ra>
